<compile_context>
chip_gen: v6e
topology: v6e:2x2x1
jax: 0.10.0
libtpu: 0.0.40
codegen_flags: <defaults>
</compile_context>

<pallas_src>
import jax
import jax.numpy as jnp
from jax.experimental import pallas as pl
from jax.experimental.pallas import tpu as pltpu


def _ssim_kernel(x_ref, y_ref, o_ref, xp_ref, yp_ref):
    # x_ref / y_ref: (B, H, W) unpadded planes
    # o_ref:         (B, H, W) SSIM loss map
    # xp_ref/yp_ref: (B, H+2, W+2) f32 VMEM scratch (reflection-padded planes)
    B, H, W = o_ref.shape

    def reflect_pad(src_ref, dst_ref):
        v = src_ref[...].astype(jnp.float32)                       # (B, H, W)
        dst_ref[:, 1:H + 1, 1:W + 1] = v                           # interior
        dst_ref[:, 0:1, 1:W + 1] = v[:, 1:2, :]                    # top row    <- row 1
        dst_ref[:, H + 1:H + 2, 1:W + 1] = v[:, H - 2:H - 1, :]    # bottom row <- row H-2
        # left / right columns (corners included) reflect off padded cols 2 / W-1
        dst_ref[:, :, 0:1] = dst_ref[:, :, 2:3]
        dst_ref[:, :, W + 1:W + 2] = dst_ref[:, :, W - 1:W]

    reflect_pad(x_ref, xp_ref)
    reflect_pad(y_ref, yp_ref)

    xp = xp_ref[...]                                               # (B, H+2, W+2) f32
    yp = yp_ref[...]

    def pool3(a):
        # Separable 3x3 box sum on a padded plane: horizontal then vertical.
        h = a[:, :, 0:W] + a[:, :, 1:W + 1] + a[:, :, 2:W + 2]     # (B, H+2, W)
        return h[:, 0:H, :] + h[:, 1:H + 1, :] + h[:, 2:H + 2, :]  # (B, H,   W)

    inv9 = jnp.float32(1.0 / 9.0)
    mu_x = pool3(xp) * inv9
    mu_y = pool3(yp) * inv9
    ex2 = pool3(xp * xp) * inv9
    ey2 = pool3(yp * yp) * inv9
    exy = pool3(xp * yp) * inv9

    sigma_x = ex2 - mu_x * mu_x
    sigma_y = ey2 - mu_y * mu_y
    sigma_xy = exy - mu_x * mu_y

    C1 = jnp.float32(0.01 ** 2)
    C2 = jnp.float32(0.03 ** 2)
    ssim_n = (2.0 * mu_x * mu_y + C1) * (2.0 * sigma_xy + C2)
    ssim_d = (mu_x * mu_x + mu_y * mu_y + C1) * (sigma_x + sigma_y + C2)

    ratio = ssim_n * pl.reciprocal(ssim_d, approx=True)            # EUP, VALU stays free
    out = jnp.clip((1.0 - ratio) * 0.5, 0.0, 1.0)
    o_ref[...] = out.astype(o_ref.dtype)


def ssim_pallas(x, y):
    """x, y: (N, C, H, W) float32. Returns (N, C, H, W) SSIM loss map."""
    N, C, H, W = x.shape
    P = N * C
    x2 = x.reshape(P, H, W)
    y2 = y.reshape(P, H, W)

    # --- choose planes-per-block so the per-step VMEM working set stays small ---
    # rough f32 working set per plane: double-buffered I/O (~24*H*W bytes),
    # 2 padded scratch planes (~8*H*W) and live temporaries (~40*H*W).
    bytes_per_plane = 72 * H * W
    budget = 12 * 1024 * 1024
    b_target = max(1, budget // bytes_per_plane)
    if P >= 2:
        # keep at least 2 grid steps so v7x's second TensorCore has work
        b_target = min(b_target, pl.cdiv(P, 2))
    b_target = min(b_target, P)
    B = 1
    for d in range(1, b_target + 1):      # largest divisor of P that fits the budget
        if P % d == 0:
            B = d
    grid = (P // B,)

    out = pl.pallas_call(
        _ssim_kernel,
        out_shape=jax.ShapeDtypeStruct((P, H, W), x.dtype),
        grid_spec=pltpu.PrefetchScalarGridSpec(
            num_scalar_prefetch=0,
            grid=grid,
            in_specs=[
                pl.BlockSpec((B, H, W), lambda i: (i, 0, 0)),
                pl.BlockSpec((B, H, W), lambda i: (i, 0, 0)),
            ],
            out_specs=pl.BlockSpec((B, H, W), lambda i: (i, 0, 0)),
            scratch_shapes=[
                pltpu.VMEM((B, H + 2, W + 2), jnp.float32),
                pltpu.VMEM((B, H + 2, W + 2), jnp.float32),
            ],
        ),
        compiler_params=pltpu.CompilerParams(
            dimension_semantics=("parallel",),
            vmem_limit_bytes=32 * 1024 * 1024,
        ),
    )(x2, y2)
    return out.reshape(N, C, H, W)


def _ssim_ref(x, y):
    """Pure-JAX reference matching the PyTorch ManyDepth SSIM module."""
    def avg_pool3(a):
        ap = jnp.pad(a, ((0, 0), (0, 0), (1, 1), (1, 1)), mode="reflect")
        H, W = a.shape[2], a.shape[3]
        acc = jnp.zeros_like(a)
        for di in range(3):
            for dj in range(3):
                acc = acc + ap[:, :, di:di + H, dj:dj + W]
        return acc / 9.0

    C1, C2 = 0.01 ** 2, 0.03 ** 2
    mu_x = avg_pool3(x)
    mu_y = avg_pool3(y)
    sigma_x = avg_pool3(x * x) - mu_x ** 2
    sigma_y = avg_pool3(y * y) - mu_y ** 2
    sigma_xy = avg_pool3(x * y) - mu_x * mu_y
    n = (2 * mu_x * mu_y + C1) * (2 * sigma_xy + C2)
    d = (mu_x ** 2 + mu_y ** 2 + C1) * (sigma_x + sigma_y + C2)
    return jnp.clip((1 - n / d) / 2, 0.0, 1.0)


if __name__ == "__main__":
    key = jax.random.PRNGKey(0)
    kx, ky = jax.random.split(key)
    N, C, H, W = 2, 4, 16, 16
    x = jax.random.uniform(kx, (N, C, H, W), dtype=jnp.float32)
    y = jax.random.uniform(ky, (N, C, H, W), dtype=jnp.float32)

    out = ssim_pallas(x, y)
    out = jax.block_until_ready(out)

    ref = _ssim_ref(x, y)
    assert out.shape == (N, C, H, W)
    # tolerance loosened slightly to cover the approx (EUP) reciprocal
    assert jnp.allclose(out, ref, atol=5e-3, rtol=0.0), float(jnp.max(jnp.abs(out - ref)))

    print("KERNEL_OK")
</pallas_src>

<mosaic_0001>
module attributes {stable_mosaic.version = 11 : i64} {
  func.func @_ssim_kernel(%arg0: i32, %arg1: memref<4x16x16xf32, #tpu.memory_space<vmem>>, %arg2: memref<4x16x16xf32, #tpu.memory_space<vmem>>, %arg3: memref<4x16x16xf32, #tpu.memory_space<vmem>>, %arg4: memref<4x18x18xf32, #tpu.memory_space<vmem>>, %arg5: memref<4x18x18xf32, #tpu.memory_space<vmem>>) attributes {dimension_semantics = [#tpu.dimension_semantics<parallel>], iteration_bounds = array<i64: 2>, scalar_prefetch = 0 : i64, scratch_operands = 2 : i64, tpu.core_type = #tpu.core_type<tc>, window_params = [{transform_indices = @transform_0, window_bounds = array<i64: 4, 16, 16>}, {transform_indices = @transform_1, window_bounds = array<i64: 4, 16, 16>}, {transform_indices = @transform_2, window_bounds = array<i64: 4, 16, 16>}]} {
    %c0 = arith.constant 0 : index
    %c0_0 = arith.constant 0 : index
    %c0_1 = arith.constant 0 : index
    %0 = vector.load %arg1[%c0, %c0_0, %c0_1] : memref<4x16x16xf32, #tpu.memory_space<vmem>>, vector<4x16x16xf32>
    %c0_2 = arith.constant 0 : index
    %c1 = arith.constant 1 : index
    %c1_3 = arith.constant 1 : index
    %1 = vector.load %arg4[%c0_2, %c1, %c1_3] : memref<4x18x18xf32, #tpu.memory_space<vmem>>, vector<4x16x16xf32>
    tpu.vector_store %arg4[%c0_2, %c1, %c1_3], %0 {strides = array<i32>} : memref<4x18x18xf32, #tpu.memory_space<vmem>>, vector<4x16x16xf32>,
    %2 = vector.extract_strided_slice %0 {offsets = [0, 1, 0], sizes = [4, 1, 16], strides = [1, 1, 1]} : vector<4x16x16xf32> to vector<4x1x16xf32>
    %c0_4 = arith.constant 0 : index
    %c0_5 = arith.constant 0 : index
    %c1_6 = arith.constant 1 : index
    %3 = vector.load %arg4[%c0_4, %c0_5, %c1_6] : memref<4x18x18xf32, #tpu.memory_space<vmem>>, vector<4x1x16xf32>
    tpu.vector_store %arg4[%c0_4, %c0_5, %c1_6], %2 {strides = array<i32>} : memref<4x18x18xf32, #tpu.memory_space<vmem>>, vector<4x1x16xf32>,
    %4 = vector.extract_strided_slice %0 {offsets = [0, 14, 0], sizes = [4, 1, 16], strides = [1, 1, 1]} : vector<4x16x16xf32> to vector<4x1x16xf32>
    %c0_7 = arith.constant 0 : index
    %c17 = arith.constant 17 : index
    %c1_8 = arith.constant 1 : index
    %5 = vector.load %arg4[%c0_7, %c17, %c1_8] : memref<4x18x18xf32, #tpu.memory_space<vmem>>, vector<4x1x16xf32>
    tpu.vector_store %arg4[%c0_7, %c17, %c1_8], %4 {strides = array<i32>} : memref<4x18x18xf32, #tpu.memory_space<vmem>>, vector<4x1x16xf32>,
    %c0_9 = arith.constant 0 : index
    %c0_10 = arith.constant 0 : index
    %c2 = arith.constant 2 : index
    %6 = vector.load %arg4[%c0_9, %c0_10, %c2] : memref<4x18x18xf32, #tpu.memory_space<vmem>>, vector<4x18x1xf32>
    %c0_11 = arith.constant 0 : index
    %c0_12 = arith.constant 0 : index
    %c0_13 = arith.constant 0 : index
    %7 = vector.load %arg4[%c0_11, %c0_12, %c0_13] : memref<4x18x18xf32, #tpu.memory_space<vmem>>, vector<4x18x1xf32>
    tpu.vector_store %arg4[%c0_11, %c0_12, %c0_13], %6 {strides = array<i32>} : memref<4x18x18xf32, #tpu.memory_space<vmem>>, vector<4x18x1xf32>,
    %c0_14 = arith.constant 0 : index
    %c0_15 = arith.constant 0 : index
    %c15 = arith.constant 15 : index
    %8 = vector.load %arg4[%c0_14, %c0_15, %c15] : memref<4x18x18xf32, #tpu.memory_space<vmem>>, vector<4x18x1xf32>
    %c0_16 = arith.constant 0 : index
    %c0_17 = arith.constant 0 : index
    %c17_18 = arith.constant 17 : index
    %9 = vector.load %arg4[%c0_16, %c0_17, %c17_18] : memref<4x18x18xf32, #tpu.memory_space<vmem>>, vector<4x18x1xf32>
    tpu.vector_store %arg4[%c0_16, %c0_17, %c17_18], %8 {strides = array<i32>} : memref<4x18x18xf32, #tpu.memory_space<vmem>>, vector<4x18x1xf32>,
    %c0_19 = arith.constant 0 : index
    %c0_20 = arith.constant 0 : index
    %c0_21 = arith.constant 0 : index
    %10 = vector.load %arg2[%c0_19, %c0_20, %c0_21] : memref<4x16x16xf32, #tpu.memory_space<vmem>>, vector<4x16x16xf32>
    %c0_22 = arith.constant 0 : index
    %c1_23 = arith.constant 1 : index
    %c1_24 = arith.constant 1 : index
    %11 = vector.load %arg5[%c0_22, %c1_23, %c1_24] : memref<4x18x18xf32, #tpu.memory_space<vmem>>, vector<4x16x16xf32>
    tpu.vector_store %arg5[%c0_22, %c1_23, %c1_24], %10 {strides = array<i32>} : memref<4x18x18xf32, #tpu.memory_space<vmem>>, vector<4x16x16xf32>,
    %12 = vector.extract_strided_slice %10 {offsets = [0, 1, 0], sizes = [4, 1, 16], strides = [1, 1, 1]} : vector<4x16x16xf32> to vector<4x1x16xf32>
    %c0_25 = arith.constant 0 : index
    %c0_26 = arith.constant 0 : index
    %c1_27 = arith.constant 1 : index
    %13 = vector.load %arg5[%c0_25, %c0_26, %c1_27] : memref<4x18x18xf32, #tpu.memory_space<vmem>>, vector<4x1x16xf32>
    tpu.vector_store %arg5[%c0_25, %c0_26, %c1_27], %12 {strides = array<i32>} : memref<4x18x18xf32, #tpu.memory_space<vmem>>, vector<4x1x16xf32>,
    %14 = vector.extract_strided_slice %10 {offsets = [0, 14, 0], sizes = [4, 1, 16], strides = [1, 1, 1]} : vector<4x16x16xf32> to vector<4x1x16xf32>
    %c0_28 = arith.constant 0 : index
    %c17_29 = arith.constant 17 : index
    %c1_30 = arith.constant 1 : index
    %15 = vector.load %arg5[%c0_28, %c17_29, %c1_30] : memref<4x18x18xf32, #tpu.memory_space<vmem>>, vector<4x1x16xf32>
    tpu.vector_store %arg5[%c0_28, %c17_29, %c1_30], %14 {strides = array<i32>} : memref<4x18x18xf32, #tpu.memory_space<vmem>>, vector<4x1x16xf32>,
    %c0_31 = arith.constant 0 : index
    %c0_32 = arith.constant 0 : index
    %c2_33 = arith.constant 2 : index
    %16 = vector.load %arg5[%c0_31, %c0_32, %c2_33] : memref<4x18x18xf32, #tpu.memory_space<vmem>>, vector<4x18x1xf32>
    %c0_34 = arith.constant 0 : index
    %c0_35 = arith.constant 0 : index
    %c0_36 = arith.constant 0 : index
    %17 = vector.load %arg5[%c0_34, %c0_35, %c0_36] : memref<4x18x18xf32, #tpu.memory_space<vmem>>, vector<4x18x1xf32>
    tpu.vector_store %arg5[%c0_34, %c0_35, %c0_36], %16 {strides = array<i32>} : memref<4x18x18xf32, #tpu.memory_space<vmem>>, vector<4x18x1xf32>,
    %c0_37 = arith.constant 0 : index
    %c0_38 = arith.constant 0 : index
    %c15_39 = arith.constant 15 : index
    %18 = vector.load %arg5[%c0_37, %c0_38, %c15_39] : memref<4x18x18xf32, #tpu.memory_space<vmem>>, vector<4x18x1xf32>
    %c0_40 = arith.constant 0 : index
    %c0_41 = arith.constant 0 : index
    %c17_42 = arith.constant 17 : index
    %19 = vector.load %arg5[%c0_40, %c0_41, %c17_42] : memref<4x18x18xf32, #tpu.memory_space<vmem>>, vector<4x18x1xf32>
    tpu.vector_store %arg5[%c0_40, %c0_41, %c17_42], %18 {strides = array<i32>} : memref<4x18x18xf32, #tpu.memory_space<vmem>>, vector<4x18x1xf32>,
    %c0_43 = arith.constant 0 : index
    %c0_44 = arith.constant 0 : index
    %c0_45 = arith.constant 0 : index
    %20 = vector.load %arg4[%c0_43, %c0_44, %c0_45] : memref<4x18x18xf32, #tpu.memory_space<vmem>>, vector<4x18x18xf32>
    %c0_46 = arith.constant 0 : index
    %c0_47 = arith.constant 0 : index
    %c0_48 = arith.constant 0 : index
    %21 = vector.load %arg5[%c0_46, %c0_47, %c0_48] : memref<4x18x18xf32, #tpu.memory_space<vmem>>, vector<4x18x18xf32>
    %22 = vector.extract_strided_slice %20 {offsets = [0, 0, 0], sizes = [4, 18, 16], strides = [1, 1, 1]} : vector<4x18x18xf32> to vector<4x18x16xf32>
    %23 = vector.extract_strided_slice %20 {offsets = [0, 0, 1], sizes = [4, 18, 16], strides = [1, 1, 1]} : vector<4x18x18xf32> to vector<4x18x16xf32>
    %24 = arith.addf %22, %23 : vector<4x18x16xf32>
    %25 = vector.extract_strided_slice %20 {offsets = [0, 0, 2], sizes = [4, 18, 16], strides = [1, 1, 1]} : vector<4x18x18xf32> to vector<4x18x16xf32>
    %26 = arith.addf %24, %25 : vector<4x18x16xf32>
    %27 = vector.extract_strided_slice %26 {offsets = [0, 0, 0], sizes = [4, 16, 16], strides = [1, 1, 1]} : vector<4x18x16xf32> to vector<4x16x16xf32>
    %28 = vector.extract_strided_slice %26 {offsets = [0, 1, 0], sizes = [4, 16, 16], strides = [1, 1, 1]} : vector<4x18x16xf32> to vector<4x16x16xf32>
    %29 = arith.addf %27, %28 : vector<4x16x16xf32>
    %30 = vector.extract_strided_slice %26 {offsets = [0, 2, 0], sizes = [4, 16, 16], strides = [1, 1, 1]} : vector<4x18x16xf32> to vector<4x16x16xf32>
    %31 = arith.addf %29, %30 : vector<4x16x16xf32>
    %cst = arith.constant 0.111111112 : f32
    %32 = vector.broadcast %cst : f32 to vector<4x16x16xf32>
    %33 = arith.mulf %31, %32 : vector<4x16x16xf32>
    %34 = vector.extract_strided_slice %21 {offsets = [0, 0, 0], sizes = [4, 18, 16], strides = [1, 1, 1]} : vector<4x18x18xf32> to vector<4x18x16xf32>
    %35 = vector.extract_strided_slice %21 {offsets = [0, 0, 1], sizes = [4, 18, 16], strides = [1, 1, 1]} : vector<4x18x18xf32> to vector<4x18x16xf32>
    %36 = arith.addf %34, %35 : vector<4x18x16xf32>
    %37 = vector.extract_strided_slice %21 {offsets = [0, 0, 2], sizes = [4, 18, 16], strides = [1, 1, 1]} : vector<4x18x18xf32> to vector<4x18x16xf32>
    %38 = arith.addf %36, %37 : vector<4x18x16xf32>
    %39 = vector.extract_strided_slice %38 {offsets = [0, 0, 0], sizes = [4, 16, 16], strides = [1, 1, 1]} : vector<4x18x16xf32> to vector<4x16x16xf32>
    %40 = vector.extract_strided_slice %38 {offsets = [0, 1, 0], sizes = [4, 16, 16], strides = [1, 1, 1]} : vector<4x18x16xf32> to vector<4x16x16xf32>
    %41 = arith.addf %39, %40 : vector<4x16x16xf32>
    %42 = vector.extract_strided_slice %38 {offsets = [0, 2, 0], sizes = [4, 16, 16], strides = [1, 1, 1]} : vector<4x18x16xf32> to vector<4x16x16xf32>
    %43 = arith.addf %41, %42 : vector<4x16x16xf32>
    %cst_49 = arith.constant 0.111111112 : f32
    %44 = vector.broadcast %cst_49 : f32 to vector<4x16x16xf32>
    %45 = arith.mulf %43, %44 : vector<4x16x16xf32>
    %46 = arith.mulf %20, %20 : vector<4x18x18xf32>
    %47 = vector.extract_strided_slice %46 {offsets = [0, 0, 0], sizes = [4, 18, 16], strides = [1, 1, 1]} : vector<4x18x18xf32> to vector<4x18x16xf32>
    %48 = vector.extract_strided_slice %46 {offsets = [0, 0, 1], sizes = [4, 18, 16], strides = [1, 1, 1]} : vector<4x18x18xf32> to vector<4x18x16xf32>
    %49 = arith.addf %47, %48 : vector<4x18x16xf32>
    %50 = vector.extract_strided_slice %46 {offsets = [0, 0, 2], sizes = [4, 18, 16], strides = [1, 1, 1]} : vector<4x18x18xf32> to vector<4x18x16xf32>
    %51 = arith.addf %49, %50 : vector<4x18x16xf32>
    %52 = vector.extract_strided_slice %51 {offsets = [0, 0, 0], sizes = [4, 16, 16], strides = [1, 1, 1]} : vector<4x18x16xf32> to vector<4x16x16xf32>
    %53 = vector.extract_strided_slice %51 {offsets = [0, 1, 0], sizes = [4, 16, 16], strides = [1, 1, 1]} : vector<4x18x16xf32> to vector<4x16x16xf32>
    %54 = arith.addf %52, %53 : vector<4x16x16xf32>
    %55 = vector.extract_strided_slice %51 {offsets = [0, 2, 0], sizes = [4, 16, 16], strides = [1, 1, 1]} : vector<4x18x16xf32> to vector<4x16x16xf32>
    %56 = arith.addf %54, %55 : vector<4x16x16xf32>
    %cst_50 = arith.constant 0.111111112 : f32
    %57 = vector.broadcast %cst_50 : f32 to vector<4x16x16xf32>
    %58 = arith.mulf %56, %57 : vector<4x16x16xf32>
    %59 = arith.mulf %21, %21 : vector<4x18x18xf32>
    %60 = vector.extract_strided_slice %59 {offsets = [0, 0, 0], sizes = [4, 18, 16], strides = [1, 1, 1]} : vector<4x18x18xf32> to vector<4x18x16xf32>
    %61 = vector.extract_strided_slice %59 {offsets = [0, 0, 1], sizes = [4, 18, 16], strides = [1, 1, 1]} : vector<4x18x18xf32> to vector<4x18x16xf32>
    %62 = arith.addf %60, %61 : vector<4x18x16xf32>
    %63 = vector.extract_strided_slice %59 {offsets = [0, 0, 2], sizes = [4, 18, 16], strides = [1, 1, 1]} : vector<4x18x18xf32> to vector<4x18x16xf32>
    %64 = arith.addf %62, %63 : vector<4x18x16xf32>
    %65 = vector.extract_strided_slice %64 {offsets = [0, 0, 0], sizes = [4, 16, 16], strides = [1, 1, 1]} : vector<4x18x16xf32> to vector<4x16x16xf32>
    %66 = vector.extract_strided_slice %64 {offsets = [0, 1, 0], sizes = [4, 16, 16], strides = [1, 1, 1]} : vector<4x18x16xf32> to vector<4x16x16xf32>
    %67 = arith.addf %65, %66 : vector<4x16x16xf32>
    %68 = vector.extract_strided_slice %64 {offsets = [0, 2, 0], sizes = [4, 16, 16], strides = [1, 1, 1]} : vector<4x18x16xf32> to vector<4x16x16xf32>
    %69 = arith.addf %67, %68 : vector<4x16x16xf32>
    %cst_51 = arith.constant 0.111111112 : f32
    %70 = vector.broadcast %cst_51 : f32 to vector<4x16x16xf32>
    %71 = arith.mulf %69, %70 : vector<4x16x16xf32>
    %72 = arith.mulf %20, %21 : vector<4x18x18xf32>
    %73 = vector.extract_strided_slice %72 {offsets = [0, 0, 0], sizes = [4, 18, 16], strides = [1, 1, 1]} : vector<4x18x18xf32> to vector<4x18x16xf32>
    %74 = vector.extract_strided_slice %72 {offsets = [0, 0, 1], sizes = [4, 18, 16], strides = [1, 1, 1]} : vector<4x18x18xf32> to vector<4x18x16xf32>
    %75 = arith.addf %73, %74 : vector<4x18x16xf32>
    %76 = vector.extract_strided_slice %72 {offsets = [0, 0, 2], sizes = [4, 18, 16], strides = [1, 1, 1]} : vector<4x18x18xf32> to vector<4x18x16xf32>
    %77 = arith.addf %75, %76 : vector<4x18x16xf32>
    %78 = vector.extract_strided_slice %77 {offsets = [0, 0, 0], sizes = [4, 16, 16], strides = [1, 1, 1]} : vector<4x18x16xf32> to vector<4x16x16xf32>
    %79 = vector.extract_strided_slice %77 {offsets = [0, 1, 0], sizes = [4, 16, 16], strides = [1, 1, 1]} : vector<4x18x16xf32> to vector<4x16x16xf32>
    %80 = arith.addf %78, %79 : vector<4x16x16xf32>
    %81 = vector.extract_strided_slice %77 {offsets = [0, 2, 0], sizes = [4, 16, 16], strides = [1, 1, 1]} : vector<4x18x16xf32> to vector<4x16x16xf32>
    %82 = arith.addf %80, %81 : vector<4x16x16xf32>
    %cst_52 = arith.constant 0.111111112 : f32
    %83 = vector.broadcast %cst_52 : f32 to vector<4x16x16xf32>
    %84 = arith.mulf %82, %83 : vector<4x16x16xf32>
    %85 = arith.mulf %33, %33 : vector<4x16x16xf32>
    %86 = arith.subf %58, %85 : vector<4x16x16xf32>
    %87 = arith.mulf %45, %45 : vector<4x16x16xf32>
    %88 = arith.subf %71, %87 : vector<4x16x16xf32>
    %89 = arith.mulf %33, %45 : vector<4x16x16xf32>
    %90 = arith.subf %84, %89 : vector<4x16x16xf32>
    %cst_53 = arith.constant 2.000000e+00 : f32
    %91 = vector.broadcast %cst_53 : f32 to vector<4x16x16xf32>
    %92 = arith.mulf %91, %33 : vector<4x16x16xf32>
    %93 = arith.mulf %92, %45 : vector<4x16x16xf32>
    %cst_54 = arith.constant 9.99999974E-5 : f32
    %94 = vector.broadcast %cst_54 : f32 to vector<4x16x16xf32>
    %95 = arith.addf %93, %94 : vector<4x16x16xf32>
    %cst_55 = arith.constant 2.000000e+00 : f32
    %96 = vector.broadcast %cst_55 : f32 to vector<4x16x16xf32>
    %97 = arith.mulf %96, %90 : vector<4x16x16xf32>
    %cst_56 = arith.constant 8.99999984E-4 : f32
    %98 = vector.broadcast %cst_56 : f32 to vector<4x16x16xf32>
    %99 = arith.addf %97, %98 : vector<4x16x16xf32>
    %100 = arith.mulf %95, %99 : vector<4x16x16xf32>
    %101 = arith.mulf %33, %33 : vector<4x16x16xf32>
    %102 = arith.mulf %45, %45 : vector<4x16x16xf32>
    %103 = arith.addf %101, %102 : vector<4x16x16xf32>
    %cst_57 = arith.constant 9.99999974E-5 : f32
    %104 = vector.broadcast %cst_57 : f32 to vector<4x16x16xf32>
    %105 = arith.addf %103, %104 : vector<4x16x16xf32>
    %106 = arith.addf %86, %88 : vector<4x16x16xf32>
    %cst_58 = arith.constant 8.99999984E-4 : f32
    %107 = vector.broadcast %cst_58 : f32 to vector<4x16x16xf32>
    %108 = arith.addf %106, %107 : vector<4x16x16xf32>
    %109 = arith.mulf %105, %108 : vector<4x16x16xf32>
    %110 = tpu.reciprocal %109 {approx = true} : vector<4x16x16xf32> -> vector<4x16x16xf32>
    %111 = arith.mulf %100, %110 : vector<4x16x16xf32>
    %cst_59 = arith.constant 1.000000e+00 : f32
    %112 = vector.broadcast %cst_59 : f32 to vector<4x16x16xf32>
    %113 = arith.subf %112, %111 : vector<4x16x16xf32>
    %cst_60 = arith.constant 5.000000e-01 : f32
    %114 = vector.broadcast %cst_60 : f32 to vector<4x16x16xf32>
    %115 = arith.mulf %113, %114 : vector<4x16x16xf32>
    %cst_61 = arith.constant 0.000000e+00 : f32
    %cst_62 = arith.constant 1.000000e+00 : f32
    %116 = vector.broadcast %cst_61 : f32 to vector<4x16x16xf32>
    %117 = arith.maximumf %116, %115 : vector<4x16x16xf32>
    %118 = vector.broadcast %cst_62 : f32 to vector<4x16x16xf32>
    %119 = arith.minimumf %118, %117 : vector<4x16x16xf32>
    %c0_63 = arith.constant 0 : index
    %c0_64 = arith.constant 0 : index
    %c0_65 = arith.constant 0 : index
    %120 = vector.load %arg3[%c0_63, %c0_64, %c0_65] : memref<4x16x16xf32, #tpu.memory_space<vmem>>, vector<4x16x16xf32>
    tpu.vector_store %arg3[%c0_63, %c0_64, %c0_65], %119 {strides = array<i32>} : memref<4x16x16xf32, #tpu.memory_space<vmem>>, vector<4x16x16xf32>,
    return
  }
  func.func @transform_0(%arg0: i32) -> (i32, i32, i32) {
    %c0_i32 = arith.constant 0 : i32
    %c0_i32_0 = arith.constant 0 : i32
    %c0_i32_1 = arith.constant 0 : i32
    return %arg0, %c0_i32, %c0_i32_0 : i32, i32, i32
  }
  func.func @transform_1(%arg0: i32) -> (i32, i32, i32) {
    %c0_i32 = arith.constant 0 : i32
    %c0_i32_0 = arith.constant 0 : i32
    %c0_i32_1 = arith.constant 0 : i32
    return %arg0, %c0_i32, %c0_i32_0 : i32, i32, i32
  }
  func.func @transform_2(%arg0: i32) -> (i32, i32, i32) {
    %c0_i32 = arith.constant 0 : i32
    %c0_i32_0 = arith.constant 0 : i32
    %c0_i32_1 = arith.constant 0 : i32
    return %arg0, %c0_i32, %c0_i32_0 : i32, i32, i32
  }
}

</mosaic_0001>

<bundles_post_ra>
// kernel: tpu_custom_call.1
= control target key start
LH: loop header
LB: loop body
LE: loop exit
PB: predicated region body
PF: predicated region fallthrough
CT: control target
= control target key end

     0   :  { %7 = vsyncpa [#allocation5], 0  ;;  %s3721_s0 = inlined_call_operand.hbm [shape: f32[8,16,16], index: 0, kind: input, shape index: {}]   ;;  %s3722_s1 = inlined_call_operand.hbm [shape: f32[8,16,16], index: 1, kind: input, shape index: {}]   ;;  %s3723_s2 = inlined_call_operand.hbm [shape: f32[8,16,16], index: 2, kind: output, shape index: {}]  }
   0x1   :  { %9 = vsyncpa [#allocation5 + $0x1], 0 }
   0x2   :  { %10 = vsyncpa [#allocation8], 0 }
   0x3   :  { %12 = vsyncpa [#allocation8 + $0x1], 0 }
   0x4   :  { %13 = vsyncpa [#allocation6], 0 }
   0x5   :  { %15 = vsyncpa [#allocation6 + $0x1], 0  ;;  %s2234_s9 = smov 0   ;;  %s2236_s10 = smov 0  }
   0x6   :  { %s2238_s11 = smov 0   ;;  %s2240_s12 = smov 0  }
   0x7 LB: > { %s2255_s13 = sadd.s32 4294967295, %s2206_s12   ;;  %s1980_s14 = sadd.s32 4294967294, %s2206_s12   ;;  %s2206_s12 = sphi %s2240_s12, %s3942_s12   ;;  %s2202_s11 = sphi %s2238_s11, %s3941_s11   ;;  %s2198_s10 = sphi %s2236_s10, %s3940_s10   ;;  %s2194_s9 = sphi %s2234_s9, %s3939_s9  }
   0x8   : > { %s2259_s15 = sadd.s32 1, %s2206_s12   ;;  %s28_s16 = sadd.s32 1, %s2202_s11 }
   0x9   : > { %s25_s17 = ssub.s32 %s2206_s12, %s2259_s15  ;;  %p35_p0 = scmp.ne.s32.totalorder %s2202_s11, %s2198_s10 }
   0xa   : > { %p26_p1 = scmp.eq.s32.totalorder %s25_s17, 0  ;;  %p36_p2 = scmp.eq.s32.totalorder %s2206_s12, 0 }
   0xb   : > { %p41_p3 = scmp.ne.s32.totalorder %s2198_s10, %s2194_s9  ;;  %p42_p4 = scmp.eq.s32.totalorder %s2255_s13, 0 }
   0xc   : > { %s2271_s18 = scalar_select %p26_p1, %s2202_s11, %s28_s16  }
   0xd   : > { %p2273_p5 = por %p36_p2, %p35_p0  ;;  %p2277_p6 = por %p42_p4, %p41_p3 }
   0xe   : > { %p91_p7 = scmp.eq.s32.totalorder %s2255_s13, 1  ;;  %p97_p8 = scmp.eq.s32.totalorder %s1980_s14, 1 }
   0xf   : > { %s3788_s20 = scalar_select %p2277_p6, 1, 0 }
  0x10   : > { %p2024_p10 = scmp.lt.s32.totalorder %s2206_s12, 2  ;;  %p2284_p11 = por %p91_p7, %p35_p0 }
  0x11   : > { %p2288_p12 = por %p97_p8, %p41_p3  ;;  %s2293_s23 = sand.u32 1, %s2202_s11  }
  0x12   : > { %s3789_s21 = scalar_select %p2284_p11, 1, 0 }
  0x13   : > { %s3790_s22 = scalar_select %p2288_p12, 1, 0 }
  0x14   : > { %s2002_s24 = sshll.u32 %s2206_s12, 10  ;;  %s1983_s25 = sshll.u32 %s2293_s23, 6 }
  0x15   : > { %s2302_s28 = scalar_lea.hbm %s3721_s0, %s2002_s24  ;;  %s121_s29 = scalar_lea.vmem [#allocation4], %s1983_s25 }
  0x16   : > { %s129_s30 = sshll.u32 %s121_s29, 4  ;;  %p2308_p13 = pnand %p2024_p10, %p2273_p5  ;;  %s2312_s30 = int_to_ptr.vmem [resolvable:$true] %s129_s30 }
  0x17   : > { %s118_s4 = scalar_lea.sflag [#allocation5], %s2293_s23  ;;  %s2082_s5 = scalar_lea.hbm %s2302_s28, 1024 }
  0x18   : > { %p2083_p0 = scmp.ne.s32.totalorder %s2302_s28, %s2082_s5  ;;  %p2084_p1 = pneg %p2308_p13 }
  0x19   : > { %s2087_s8 = scalar_lea.hbm %s3721_s0, 2048  ;;  %p2088_p4 = scmp.lt.s32.totalorder %s2302_s28, %s3721_s0 }
  0x1a   : > { %p2085_p2 = pnand %p2084_p1, %p2083_p0  ;;  %p2089_p5 = scmp.lt.s32.totalorder %s2087_s8, %s2082_s5 }
  0x1c   : > { %p2086_p3 = pneg %p2085_p2  ;;  %p2090_p7 = por %p2089_p5, %p2088_p4 }
  0x1e   : > { %p2091_p8 = pnand %p2090_p7, %p2086_p3 }
  0x20   : > { %2094 = shalt.err (!%p2091_p8)
}
  0x21   : > { %s2095_s17 = scalar_lea.vmem %s2312_s30, 1024  ;;  %s2208_s19 = smov [#allocation4]  }
  0x22   : > { %p2096_p10 = scmp.ne.s32.totalorder %s2312_s30, %s2095_s17  ;;  %s2100_s26 = sshll.u32 %s2208_s19, 4  ;;  %s2101_s26 = int_to_ptr.vmem [resolvable:$false] %s2100_s26 }
  0x23   : > { %s2102_s27 = scalar_lea.vmem %s2101_s26, 2048  ;;  %p2103_p9 = scmp.lt.s32.totalorder %s2312_s30, %s2101_s26 }
  0x24   : > { %p2098_p0 = pnand %p2096_p10, %p2084_p1  ;;  %p2104_p12 = scmp.lt.s32.totalorder %s2102_s27, %s2095_s17 }
  0x26   : > { %p2099_p2 = pneg %p2098_p0  ;;  %p2105_p11 = por %p2104_p12, %p2103_p9 }
  0x28   : > { %p2106_p4 = pnand %p2105_p11, %p2099_p2 }
  0x2a   : > { %2109 = shalt.err (!%p2106_p4)
}
  0x2b   : > { %s2209_s29 = smov 128   ;;  %s2210_s5 = smov 8  }
  0x2c   : > { %2016 = dma.hbm_to_vmem [thread:$0]  (!%p2308_p13), %s2302_s28, 1024, %s2312_s30, %s118_s4, %s2209_s29, %s2209_s29, %s2210_s5  }
  0x2d   : > { %p1991_p9 = scmp.ge.s32.totalorder %s2206_s12, 1  ;;  %p159_p11 = scmp.lt.s32.totalorder %s2206_s12, 3 }
  0x2e   : > { %s2355_s14 = scalar_lea.hbm %s3722_s1, %s2002_s24  ;;  %s143_s16 = scalar_lea.vmem [#allocation7], %s1983_s25 }
  0x2f   : > { %p2346_p12 = pnand %p1991_p9, %p159_p11  ;;  %s151_s17 = sshll.u32 %s143_s16, 4  ;;  %s2359_s17 = int_to_ptr.vmem [resolvable:$true] %s151_s17 }
  0x30   : > { %s140_s28 = scalar_lea.sflag [#allocation8], %s2293_s23  ;;  %s2110_s30 = scalar_lea.hbm %s2355_s14, 1024 }
  0x31   : > { %p2111_p3 = scmp.ne.s32.totalorder %s2355_s14, %s2110_s30  ;;  %s2115_s24 = scalar_lea.hbm %s3722_s1, 2048 }
  0x32   : > { %p2116_p8 = scmp.lt.s32.totalorder %s2355_s14, %s3722_s1  ;;  %p2117_p10 = scmp.lt.s32.totalorder %s2115_s24, %s2110_s30 }
  0x33   : > { %p2113_p5 = pnand %p2111_p3, %p2084_p1 }
  0x34   : > { %p2118_p0 = por %p2117_p10, %p2116_p8 }
  0x35   : > { %p2114_p7 = pneg %p2113_p5 }
  0x37   : > { %p2119_p2 = pnand %p2118_p0, %p2114_p7 }
  0x39   : > { %2122 = shalt.err (!%p2119_p2)
}
  0x3a   : > { %s2123_s23 = scalar_lea.vmem %s2359_s17, 1024  ;;  %s2211_s25 = smov [#allocation7]  }
  0x3b   : > { %p2124_p4 = scmp.ne.s32.totalorder %s2359_s17, %s2123_s23  ;;  %s2128_s7 = sshll.u32 %s2211_s25, 4  ;;  %s2129_s7 = int_to_ptr.vmem [resolvable:$false] %s2128_s7 }
  0x3c   : > { %s2130_s8 = scalar_lea.vmem %s2129_s7, 2048  ;;  %p2131_p3 = scmp.lt.s32.totalorder %s2359_s17, %s2129_s7 }
  0x3d   : > { %p2126_p9 = pnand %p2124_p4, %p2084_p1  ;;  %p2132_p5 = scmp.lt.s32.totalorder %s2130_s8, %s2123_s23 }
  0x3f   : > { %p2127_p11 = pneg %p2126_p9  ;;  %p2133_p6 = por %p2132_p5, %p2131_p3 }
  0x41   : > { %p2134_p8 = pnand %p2133_p6, %p2127_p11 }
  0x43   : > { %2137 = shalt.err (!%p2134_p8)
}
  0x44   : > { %2019 = dma.hbm_to_vmem [thread:$0]  (!%p2308_p13), %s2355_s14, 1024, %s2359_s17, %s140_s28, %s2209_s29, %s2209_s29, %s2210_s5  }
  0x45   : > { %163 = sbr.rel (%p2346_p12) target bundleno = 857 (0x359), region = 28 }
  0x4a   : > { %s2390_s16 = sand.u32 1, %s2198_s10   ;;  %p3793_p6 = scmp.ne.s32.totalorder %s3788_s20, 0 }
  0x4b   : > { %s2393_s30 = sshll.u32 %s2390_s16, 6  ;;  %s166_s4 = scalar_lea.sflag [#allocation5], %s2390_s16 }
  0x4c   : > { %s169_s3 = scalar_lea.vmem [#allocation4], %s2393_s30 }
  0x4d   : > { %2181 = dma.done.wait (%p3793_p6), %s166_s4, 1024  }
  0x4e   : > { %2183 = vsyncadd (%p3793_p6), %s166_s4, 4294966272  ;;  %s175_s29 = scalar_lea.sflag [#allocation8], %s2390_s16  ;;  %s2403_s5 = scalar_lea.vmem [#allocation7], %s2393_s30 }
  0x4f   : > { %2185 = dma.done.wait (%p3793_p6), %s175_s29, 1024  }
  0x50   : > { %2187 = vsyncadd (%p3793_p6), %s175_s29, 4294966272  ;;  %v207_v0 = vld [vmem:[%s169_s3] sm:$0xff]  ;;  %v209_v1 = vld [vmem:[%s169_s3 + $0x10] sm:$0xff]  ;;  %s2212_s6 = smov 1   ;;  %vm247_vm0 = vcmask 138248   ;;  %vm256_vm1 = vcmask 132105  }
  0x51   : > { %223 = vrot.lane.b32.xlu0 %v207_v0, %s2212_s6  ;;  %227 = vrot.lane.b32.xlu1 %v209_v1, %s2212_s6  ;;  %v208_v2 = vld [vmem:[%s169_s3 + $0x8] sm:$0xff]  ;;  %v210_v3 = vld [vmem:[%s169_s3 + $0x18] sm:$0xff]  ;;  %vm261_vm2 = vcmask 137230   ;;  %s2213_s20 = smov 126   ;;  %vm326_vm3 = vcmask 7168   ;;  %vm329_vm4 = vcmask 1024  }
  0x52   : > { %v211_v4 = vld [vmem:[%s169_s3 + $0x20] sm:$0xff]  ;;  %v212_v5 = vld [vmem:[%s169_s3 + $0x28] sm:$0xff]  ;;  %v214_v6 = vld [vmem:[%s169_s3 + $0x38] sm:$0xff]  ;;  %s2214_s14 = smov 2   ;;  %vm400_vm5 = vcmask 146568   ;;  %vm403_vm6 = vcmask 140424  }
  0x53   : > { %v213_v7 = vld [vmem:[%s169_s3 + $0x30] sm:$0xff]  ;;  %v414_v8 = vld [vmem:[%s2403_s5] sm:$0xff]  ;;  %v415_v9 = vld [vmem:[%s2403_s5 + $0x8] sm:$0xff]  ;;  %s2215_s17 = smov 127   ;;  %vm758_vm7 = vcmask 1046528   ;;  %vm795_vm8 = vcmask 1045504  }
  0x54   : > { %v417_v10 = vld [vmem:[%s2403_s5 + $0x18] sm:$0xff]  ;;  %v416_v11 = vld [vmem:[%s2403_s5 + $0x10] sm:$0xff]  ;;  %v418_v12 = vld [vmem:[%s2403_s5 + $0x20] sm:$0xff]  ;;  %vm1860_vm9 = vcmask 130048   ;;  %s3640_s28 = scalar_lea.vmem [#allocation9], %s2393_s30  ;;  %s2006_s19 = sshll.u32 %s2255_s13, 10 }
  0x55   : > { %225 = vrot.lane.b32.xlu0 %v208_v2, %s2212_s6  ;;  %229 = vrot.lane.b32.xlu1 %v210_v3, %s2212_s6  ;;  %v419_v13 = vld [vmem:[%s2403_s5 + $0x28] sm:$0xff]  ;;  %v421_v14 = vld [vmem:[%s2403_s5 + $0x38] sm:$0xff]  ;;  %s1884_s24 = sshll.u32 %s3640_s28, 4  ;;  %s3674_s23 = scalar_lea.hbm %s3723_s2, %s2006_s19  ;;  %s3676_s24 = int_to_ptr.vmem [resolvable:$true] %s1884_s24 }
  0x56   : > { %v420_v15 = vld [vmem:[%s2403_s5 + $0x30] sm:$0xff]  ;;  %s1870_s25 = scalar_lea.sflag [#allocation6], %s2390_s16  ;;  %s2138_s7 = scalar_lea.vmem %s3676_s24, 1024 }
  0x57   : > { %p2139_p13 = scmp.ne.s32.totalorder %s3676_s24, %s2138_s7  ;;  %p3936_p1 = scmp.ne.s32.totalorder %s3789_s21, 0 }
  0x58   : > { %s2216_s13 = smov [#allocation9]  }
  0x59   : > { %231 = vrot.lane.b32.xlu0 %v211_v4, %s2212_s6  ;;  %233 = vrot.lane.b32.xlu1 %v212_v5, %s2212_s6  ;;  %p2140_p12 = pnand %p2139_p13, %p3936_p1  ;;  %s2142_s8 = sshll.u32 %s2216_s13, 4  ;;  %s2143_s8 = int_to_ptr.vmem [resolvable:$false] %s2142_s8 }
  0x5a   : > { %s2144_s30 = scalar_lea.vmem %s2143_s8, 2048  ;;  %p2145_p10 = scmp.lt.s32.totalorder %s3676_s24, %s2143_s8 }
  0x5b   : > { %p2141_p7 = pneg %p2140_p12  ;;  %p2146_p0 = scmp.lt.s32.totalorder %s2144_s30, %s2138_s7 }
  0x5d   : > { %237 = vrot.lane.b32.xlu1 %v214_v6, %s2212_s6  ;;  %235 = vrot.lane.b32.xlu0 %v213_v7, %s2212_s6  ;;  %p2147_p2 = por %p2146_p0, %p2145_p10 }
  0x5f   : > { %p2148_p4 = pnand %p2147_p2, %p2141_p7 }
  0x61   : > { %430 = vrot.lane.b32.xlu0 %v414_v8, %s2212_s6  ;;  %432 = vrot.lane.b32.xlu1 %v415_v9, %s2212_s6 }
  0x65   : > { %436 = vrot.lane.b32.xlu1 %v417_v10, %s2212_s6  ;;  %434 = vrot.lane.b32.xlu0 %v416_v11, %s2212_s6 }
  0x69   : > { %438 = vrot.lane.b32.xlu0 %v418_v12, %s2212_s6  ;;  %440 = vrot.lane.b32.xlu1 %v419_v13, %s2212_s6 }
  0x6d   : > { %444 = vrot.lane.b32.xlu1 %v421_v14, %s2212_s6  ;;  %442 = vrot.lane.b32.xlu0 %v420_v15, %s2212_s6 }
  0xc3   : > { %v224_v16 = vpop.permute.xlu0 %223  ;;  %v228_v17 = vpop.permute.xlu1 %227 }
  0xc4   : > { %248 = vst.msk [vmem:[#allocation2 + $0x1] sm:$0xff] %vm247_vm0, %v224_v16  ;;  %250 = vst.msk [vmem:[#allocation2 + $0x19] sm:$0xff] %vm247_vm0, %v228_v17 }
  0xc5   : > { %257 = vst.msk [vmem:[#allocation2 - $0x1] sm:$0x2] %vm256_vm1, %v224_v16  ;;  %258 = vst.msk [vmem:[#allocation2 + $0x17] sm:$0x2] %vm256_vm1, %v228_v17 }
  0xc7   : > { %v226_v18 = vpop.permute.xlu0 %225  ;;  %v230_v19 = vpop.permute.xlu1 %229 }
  0xc8   : > { %249 = vst.msk [vmem:[#allocation2 + $0x9] sm:$0xff] %vm247_vm0, %v226_v18  ;;  %251 = vst.msk [vmem:[#allocation2 + $0x21] sm:$0xff] %vm247_vm0, %v230_v19 }
  0xc9   : > { %262 = vst.msk [vmem:[#allocation2 + $0xb] sm:$0x40] %vm261_vm2, %v226_v18  ;;  %263 = vst.msk [vmem:[#allocation2 + $0x23] sm:$0x40] %vm261_vm2, %v230_v19 }
  0xcb   : > { %v232_v21 = vpop.permute.xlu0 %231  ;;  %v234_v22 = vpop.permute.xlu1 %233 }
  0xcc   : > { %v266_v20 = vld [vmem:[#allocation2] sm:$0xff]  ;;  %252 = vst.msk [vmem:[#allocation2 + $0x31] sm:$0xff] %vm247_vm0, %v232_v21  ;;  %253 = vst.msk [vmem:[#allocation2 + $0x39] sm:$0xff] %vm247_vm0, %v234_v22  ;;  %v269_v28 = vld [vmem:[#allocation2 + $0x18] sm:$0xff] }
  0xcd   : > { %290 = vrot.lane.b32.xlu0 %v266_v20, %s2213_s20  ;;  %259 = vst.msk [vmem:[#allocation2 + $0x2f] sm:$0x2] %vm256_vm1, %v232_v21 }
  0xce   : > { %264 = vst.msk [vmem:[#allocation2 + $0x3b] sm:$0x40] %vm261_vm2, %v234_v22 }
  0xcf   : > { %v267_v24 = vld [vmem:[#allocation2 + $0x8] sm:$0xff]  ;;  %v238_v25 = vpop.permute.xlu1 %237  ;;  %v236_v26 = vpop.permute.xlu0 %235  ;;  %v270_v27 = vld [vmem:[#allocation2 + $0x20] sm:$0xff] }
  0xd0   : > { %v268_v23 = vld [vmem:[#allocation2 + $0x10] sm:$0x3]  ;;  %292 = vrot.lane.b32.xlu1 %v267_v24, %s2213_s20  ;;  %255 = vst.msk [vmem:[#allocation2 + $0x51] sm:$0xff] %vm247_vm0, %v238_v25  ;;  %254 = vst.msk [vmem:[#allocation2 + $0x49] sm:$0xff] %vm247_vm0, %v236_v26  ;;  %v271_v31 = vld [vmem:[#allocation2 + $0x28] sm:$0x3] }
  0xd1   : > { %294 = vrot.lane.b32.xlu0 %v268_v23, %s2213_s20  ;;  %265 = vst.msk [vmem:[#allocation2 + $0x53] sm:$0x40] %vm261_vm2, %v238_v25 }
  0xd2   : > { %260 = vst.msk [vmem:[#allocation2 + $0x47] sm:$0x2] %vm256_vm1, %v236_v26 }
  0xd3   : > { %v431_v29 = vpop.permute.xlu0 %430  ;;  %v433_v30 = vpop.permute.xlu1 %432  ;;  %v273_v35 = vld [vmem:[#allocation2 + $0x38] sm:$0xff] }
  0xd4   : > { %296 = vrot.lane.b32.xlu1 %v269_v28, %s2213_s20  ;;  %454 = vst.msk [vmem:[#allocation3 + $0x1] sm:$0xff] %vm247_vm0, %v431_v29  ;;  %455 = vst.msk [vmem:[#allocation3 + $0x9] sm:$0xff] %vm247_vm0, %v433_v30  ;;  %v272_v32 = vld [vmem:[#allocation2 + $0x30] sm:$0xff] }
  0xd5   : > { %298 = vrot.lane.b32.xlu0 %v270_v27, %s2213_s20  ;;  %462 = vst.msk [vmem:[#allocation3 - $0x1] sm:$0x2] %vm256_vm1, %v431_v29  ;;  %v274_v36 = vld [vmem:[#allocation2 + $0x40] sm:$0x3] }
  0xd6   : > { %466 = vst.msk [vmem:[#allocation3 + $0xb] sm:$0x40] %vm261_vm2, %v433_v30 }
  0xd7   : > { %v437_v33 = vpop.permute.xlu1 %436  ;;  %v435_v34 = vpop.permute.xlu0 %434  ;;  %v276_v39 = vld [vmem:[#allocation2 + $0x50] sm:$0xff] }
  0xd8   : > { %300 = vrot.lane.b32.xlu1 %v271_v31, %s2213_s20  ;;  %457 = vst.msk [vmem:[#allocation3 + $0x21] sm:$0xff] %vm247_vm0, %v437_v33  ;;  %456 = vst.msk [vmem:[#allocation3 + $0x19] sm:$0xff] %vm247_vm0, %v435_v34  ;;  %v277_v43 = vld [vmem:[#allocation2 + $0x58] sm:$0x3] }
  0xd9   : > { %302 = vrot.lane.b32.xlu0 %v272_v32, %s2213_s20  ;;  %467 = vst.msk [vmem:[#allocation3 + $0x23] sm:$0x40] %vm261_vm2, %v437_v33  ;;  %v275_v40 = vld [vmem:[#allocation2 + $0x48] sm:$0xff] }
  0xda   : > { %463 = vst.msk [vmem:[#allocation3 + $0x17] sm:$0x2] %vm256_vm1, %v435_v34 }
  0xdb   : > { %v439_v37 = vpop.permute.xlu0 %438  ;;  %v441_v38 = vpop.permute.xlu1 %440  ;;  %v471_v45 = vld [vmem:[#allocation3 + $0x8] sm:$0xff] }
  0xdc   : > { %304 = vrot.lane.b32.xlu1 %v273_v35, %s2213_s20  ;;  %458 = vst.msk [vmem:[#allocation3 + $0x31] sm:$0xff] %vm247_vm0, %v439_v37  ;;  %459 = vst.msk [vmem:[#allocation3 + $0x39] sm:$0xff] %vm247_vm0, %v441_v38  ;;  %v470_v44 = vld [vmem:[#allocation3] sm:$0xff] }
  0xdd   : > { %306 = vrot.lane.b32.xlu0 %v274_v36, %s2213_s20  ;;  %464 = vst.msk [vmem:[#allocation3 + $0x2f] sm:$0x2] %vm256_vm1, %v439_v37  ;;  %v472_v46 = vld [vmem:[#allocation3 + $0x10] sm:$0x3] }
  0xde   : > { %468 = vst.msk [vmem:[#allocation3 + $0x3b] sm:$0x40] %vm261_vm2, %v441_v38 }
  0xdf   : > { %v445_v41 = vpop.permute.xlu1 %444  ;;  %v443_v42 = vpop.permute.xlu0 %442  ;;  %v474_v47 = vld [vmem:[#allocation3 + $0x20] sm:$0xff] }
  0xe0   : > { %308 = vrot.lane.b32.xlu1 %v275_v40, %s2213_s20  ;;  %461 = vst.msk [vmem:[#allocation3 + $0x51] sm:$0xff] %vm247_vm0, %v445_v41  ;;  %460 = vst.msk [vmem:[#allocation3 + $0x49] sm:$0xff] %vm247_vm0, %v443_v42  ;;  %v475_v49 = vld [vmem:[#allocation3 + $0x28] sm:$0x3] }
  0xe1   : > { %310 = vrot.lane.b32.xlu0 %v276_v39, %s2213_s20  ;;  %469 = vst.msk [vmem:[#allocation3 + $0x53] sm:$0x40] %vm261_vm2, %v445_v41  ;;  %v473_v48 = vld [vmem:[#allocation3 + $0x18] sm:$0xff] }
  0xe2   : > { %465 = vst.msk [vmem:[#allocation3 + $0x47] sm:$0x2] %vm256_vm1, %v443_v42 }
  0xe3   : > { %v477_v51 = vld [vmem:[#allocation3 + $0x38] sm:$0xff] }
  0xe4   : > { %312 = vrot.lane.b32.xlu1 %v277_v43, %s2213_s20  ;;  %v476_v50 = vld [vmem:[#allocation3 + $0x30] sm:$0xff] }
  0xe5   : > { %494 = vrot.lane.b32.xlu0 %v470_v44, %s2213_s20  ;;  %v478_v52 = vld [vmem:[#allocation3 + $0x40] sm:$0x3] }
  0xe7   : > { %v480_v53 = vld [vmem:[#allocation3 + $0x50] sm:$0xff] }
  0xe8   : > { %496 = vrot.lane.b32.xlu1 %v471_v45, %s2213_s20  ;;  %v481_v55 = vld [vmem:[#allocation3 + $0x58] sm:$0x3] }
  0xe9   : > { %498 = vrot.lane.b32.xlu0 %v472_v46, %s2213_s20  ;;  %v479_v54 = vld [vmem:[#allocation3 + $0x48] sm:$0xff] }
  0xec   : > { %500 = vrot.lane.b32.xlu1 %v473_v48, %s2213_s20 }
  0xed   : > { %502 = vrot.lane.b32.xlu0 %v474_v47, %s2213_s20 }
  0xf0   : > { %504 = vrot.lane.b32.xlu1 %v475_v49, %s2213_s20 }
  0xf1   : > { %506 = vrot.lane.b32.xlu0 %v476_v50, %s2213_s20 }
  0xf4   : > { %508 = vrot.lane.b32.xlu1 %v477_v51, %s2213_s20 }
  0xf5   : > { %510 = vrot.lane.b32.xlu0 %v478_v52, %s2213_s20 }
  0xf8   : > { %512 = vrot.lane.b32.xlu1 %v479_v54, %s2213_s20 }
  0xf9   : > { %514 = vrot.lane.b32.xlu0 %v480_v53, %s2213_s20 }
  0xfc   : > { %516 = vrot.lane.b32.xlu1 %v481_v55, %s2213_s20 }
 0x13f   : > { %v291_v56 = vpop.permute.xlu0 %290 }
 0x140   : > { %327 = vst.msk [vmem:[#allocation2] sm:$0xff] %vm326_vm3, %v291_v56 }
 0x142   : > { %v293_v57 = vpop.permute.xlu1 %292 }
 0x143   : > { %v295_v58 = vpop.permute.xlu0 %294  ;;  %328 = vst.msk [vmem:[#allocation2 + $0x8] sm:$0xff] %vm326_vm3, %v293_v57 }
 0x144   : > { %330 = vst.msk [vmem:[#allocation2 + $0x10] sm:$0x3] %vm329_vm4, %v295_v58 }
 0x146   : > { %v297_v59 = vpop.permute.xlu1 %296 }
 0x147   : > { %v299_v60 = vpop.permute.xlu0 %298  ;;  %v340_v61 = vld [vmem:[#allocation2] sm:$0xff]  ;;  %331 = vst.msk [vmem:[#allocation2 + $0x18] sm:$0xff] %vm326_vm3, %v297_v59 }
 0x148   : > { %332 = vst.msk [vmem:[#allocation2 + $0x20] sm:$0xff] %vm326_vm3, %v299_v60  ;;  %364 = vrot.lane.b32.xlu0 %v340_v61, %s2214_s14 }
 0x14a   : > { %v301_v62 = vpop.permute.xlu1 %300  ;;  %v341_v0 = vld [vmem:[#allocation2 + $0x8] sm:$0xff] }
 0x14b   : > { %v303_v63 = vpop.permute.xlu0 %302  ;;  %v342_v1 = vld [vmem:[#allocation2 + $0x10] sm:$0x3]  ;;  %333 = vst.msk [vmem:[#allocation2 + $0x28] sm:$0x3] %vm329_vm4, %v301_v62  ;;  %366 = vrot.lane.b32.xlu1 %v341_v0, %s2214_s14 }
 0x14c   : > { %334 = vst.msk [vmem:[#allocation2 + $0x30] sm:$0xff] %vm326_vm3, %v303_v63  ;;  %368 = vrot.lane.b32.xlu0 %v342_v1, %s2214_s14 }
 0x14e   : > { %v305_v2 = vpop.permute.xlu1 %304  ;;  %v343_v4 = vld [vmem:[#allocation2 + $0x18] sm:$0xff] }
 0x14f   : > { %v307_v3 = vpop.permute.xlu0 %306  ;;  %v344_v5 = vld [vmem:[#allocation2 + $0x20] sm:$0xff]  ;;  %335 = vst.msk [vmem:[#allocation2 + $0x38] sm:$0xff] %vm326_vm3, %v305_v2  ;;  %370 = vrot.lane.b32.xlu1 %v343_v4, %s2214_s14 }
 0x150   : > { %336 = vst.msk [vmem:[#allocation2 + $0x40] sm:$0x3] %vm329_vm4, %v307_v3  ;;  %372 = vrot.lane.b32.xlu0 %v344_v5, %s2214_s14 }
 0x152   : > { %v309_v6 = vpop.permute.xlu1 %308  ;;  %v345_v8 = vld [vmem:[#allocation2 + $0x28] sm:$0x3] }
 0x153   : > { %v311_v7 = vpop.permute.xlu0 %310  ;;  %v346_v9 = vld [vmem:[#allocation2 + $0x30] sm:$0xff]  ;;  %337 = vst.msk [vmem:[#allocation2 + $0x48] sm:$0xff] %vm326_vm3, %v309_v6  ;;  %374 = vrot.lane.b32.xlu1 %v345_v8, %s2214_s14 }
 0x154   : > { %338 = vst.msk [vmem:[#allocation2 + $0x50] sm:$0xff] %vm326_vm3, %v311_v7  ;;  %376 = vrot.lane.b32.xlu0 %v346_v9, %s2214_s14 }
 0x156   : > { %v313_v10 = vpop.permute.xlu1 %312  ;;  %v347_v12 = vld [vmem:[#allocation2 + $0x38] sm:$0xff] }
 0x157   : > { %v495_v11 = vpop.permute.xlu0 %494  ;;  %v348_v13 = vld [vmem:[#allocation2 + $0x40] sm:$0x3]  ;;  %339 = vst.msk [vmem:[#allocation2 + $0x58] sm:$0x3] %vm329_vm4, %v313_v10  ;;  %378 = vrot.lane.b32.xlu1 %v347_v12, %s2214_s14 }
 0x158   : > { %530 = vst.msk [vmem:[#allocation3] sm:$0xff] %vm326_vm3, %v495_v11  ;;  %380 = vrot.lane.b32.xlu0 %v348_v13, %s2214_s14 }
 0x15a   : > { %v497_v14 = vpop.permute.xlu1 %496  ;;  %v349_v16 = vld [vmem:[#allocation2 + $0x48] sm:$0xff] }
 0x15b   : > { %v499_v15 = vpop.permute.xlu0 %498  ;;  %v350_v17 = vld [vmem:[#allocation2 + $0x50] sm:$0xff]  ;;  %531 = vst.msk [vmem:[#allocation3 + $0x8] sm:$0xff] %vm326_vm3, %v497_v14  ;;  %382 = vrot.lane.b32.xlu1 %v349_v16, %s2214_s14 }
 0x15c   : > { %532 = vst.msk [vmem:[#allocation3 + $0x10] sm:$0x3] %vm329_vm4, %v499_v15  ;;  %384 = vrot.lane.b32.xlu0 %v350_v17, %s2214_s14 }
 0x15e   : > { %v501_v18 = vpop.permute.xlu1 %500  ;;  %v351_v20 = vld [vmem:[#allocation2 + $0x58] sm:$0x3] }
 0x15f   : > { %v503_v19 = vpop.permute.xlu0 %502  ;;  %v542_v21 = vld [vmem:[#allocation3] sm:$0xff]  ;;  %533 = vst.msk [vmem:[#allocation3 + $0x18] sm:$0xff] %vm326_vm3, %v501_v18  ;;  %386 = vrot.lane.b32.xlu1 %v351_v20, %s2214_s14 }
 0x160   : > { %534 = vst.msk [vmem:[#allocation3 + $0x20] sm:$0xff] %vm326_vm3, %v503_v19  ;;  %566 = vrot.lane.b32.xlu0 %v542_v21, %s2214_s14 }
 0x162   : > { %v505_v22 = vpop.permute.xlu1 %504  ;;  %v543_v24 = vld [vmem:[#allocation3 + $0x8] sm:$0xff] }
 0x163   : > { %v507_v23 = vpop.permute.xlu0 %506  ;;  %v544_v25 = vld [vmem:[#allocation3 + $0x10] sm:$0x3]  ;;  %535 = vst.msk [vmem:[#allocation3 + $0x28] sm:$0x3] %vm329_vm4, %v505_v22  ;;  %568 = vrot.lane.b32.xlu1 %v543_v24, %s2214_s14 }
 0x164   : > { %536 = vst.msk [vmem:[#allocation3 + $0x30] sm:$0xff] %vm326_vm3, %v507_v23  ;;  %570 = vrot.lane.b32.xlu0 %v544_v25, %s2214_s14 }
 0x166   : > { %v509_v26 = vpop.permute.xlu1 %508  ;;  %v545_v28 = vld [vmem:[#allocation3 + $0x18] sm:$0xff] }
 0x167   : > { %v511_v27 = vpop.permute.xlu0 %510  ;;  %v546_v29 = vld [vmem:[#allocation3 + $0x20] sm:$0xff]  ;;  %537 = vst.msk [vmem:[#allocation3 + $0x38] sm:$0xff] %vm326_vm3, %v509_v26  ;;  %572 = vrot.lane.b32.xlu1 %v545_v28, %s2214_s14 }
 0x168   : > { %538 = vst.msk [vmem:[#allocation3 + $0x40] sm:$0x3] %vm329_vm4, %v511_v27  ;;  %574 = vrot.lane.b32.xlu0 %v546_v29, %s2214_s14 }
 0x16a   : > { %v513_v30 = vpop.permute.xlu1 %512  ;;  %v547_v32 = vld [vmem:[#allocation3 + $0x28] sm:$0x3] }
 0x16b   : > { %v515_v31 = vpop.permute.xlu0 %514  ;;  %v548_v33 = vld [vmem:[#allocation3 + $0x30] sm:$0xff]  ;;  %539 = vst.msk [vmem:[#allocation3 + $0x48] sm:$0xff] %vm326_vm3, %v513_v30  ;;  %576 = vrot.lane.b32.xlu1 %v547_v32, %s2214_s14 }
 0x16c   : > { %540 = vst.msk [vmem:[#allocation3 + $0x50] sm:$0xff] %vm326_vm3, %v515_v31  ;;  %578 = vrot.lane.b32.xlu0 %v548_v33, %s2214_s14 }
 0x16e   : > { %v517_v34 = vpop.permute.xlu1 %516  ;;  %v549_v35 = vld [vmem:[#allocation3 + $0x38] sm:$0xff] }
 0x16f   : > { %v550_v36 = vld [vmem:[#allocation3 + $0x40] sm:$0x3]  ;;  %541 = vst.msk [vmem:[#allocation3 + $0x58] sm:$0x3] %vm329_vm4, %v517_v34  ;;  %580 = vrot.lane.b32.xlu1 %v549_v35, %s2214_s14 }
 0x170   : > { %582 = vrot.lane.b32.xlu0 %v550_v36, %s2214_s14 }
 0x172   : > { %v551_v37 = vld [vmem:[#allocation3 + $0x48] sm:$0xff] }
 0x173   : > { %v552_v38 = vld [vmem:[#allocation3 + $0x50] sm:$0xff]  ;;  %584 = vrot.lane.b32.xlu1 %v551_v37, %s2214_s14 }
 0x174   : > { %586 = vrot.lane.b32.xlu0 %v552_v38, %s2214_s14 }
 0x176   : > { %v553_v39 = vld [vmem:[#allocation3 + $0x58] sm:$0x3] }
 0x177   : > { %588 = vrot.lane.b32.xlu1 %v553_v39, %s2214_s14 }
 0x1ba   : > { %v365_v40 = vpop.permute.xlu0 %364 }
 0x1bb   : > { %401 = vst.msk [vmem:[#allocation2] sm:$0xff] %vm400_vm5, %v365_v40 }
 0x1bd   : > { %v367_v41 = vpop.permute.xlu1 %366 }
 0x1be   : > { %v369_v42 = vpop.permute.xlu0 %368  ;;  %402 = vst.msk [vmem:[#allocation2 + $0x8] sm:$0xff] %vm400_vm5, %v367_v41 }
 0x1bf   : > { %404 = vst.msk [vmem:[#allocation2 + $0x10] sm:$0x3] %vm403_vm6, %v369_v42 }
 0x1c1   : > { %v371_v43 = vpop.permute.xlu1 %370 }
 0x1c2   : > { %v373_v44 = vpop.permute.xlu0 %372  ;;  %v2524_v45 = vld [vmem:[#allocation2] sm:$0xff]  ;;  %405 = vst.msk [vmem:[#allocation2 + $0x18] sm:$0xff] %vm400_vm5, %v371_v43 }
 0x1c3   : > { %406 = vst.msk [vmem:[#allocation2 + $0x20] sm:$0xff] %vm400_vm5, %v373_v44  ;;  %650 = vrot.lane.b32.xlu0 %v2524_v45, %s2215_s17  ;;  %v2689_v24 = vmul.f32 %v2524_v45, %v2524_v45 }
 0x1c5   : > { %v375_v46 = vpop.permute.xlu1 %374  ;;  %v2530_v48 = vld [vmem:[#allocation2 + $0x8] sm:$0xff] }
 0x1c6   : > { %v377_v47 = vpop.permute.xlu0 %376  ;;  %v2532_v49 = vld [vmem:[#allocation2 + $0x10] sm:$0x3]  ;;  %407 = vst.msk [vmem:[#allocation2 + $0x28] sm:$0x3] %vm403_vm6, %v375_v46  ;;  %652 = vrot.lane.b32.xlu1 %v2530_v48, %s2215_s17  ;;  %v2697_v25 = vmul.f32 %v2530_v48, %v2530_v48 }
 0x1c7   : > { %408 = vst.msk [vmem:[#allocation2 + $0x30] sm:$0xff] %vm400_vm5, %v377_v47  ;;  %654 = vrot.lane.b32.xlu0 %v2532_v49, %s2215_s17  ;;  %v2701_v26 = vmul.f32 %v2532_v49, %v2532_v49 }
 0x1c9   : > { %v379_v50 = vpop.permute.xlu1 %378  ;;  %v2540_v52 = vld [vmem:[#allocation2 + $0x18] sm:$0xff] }
 0x1ca   : > { %v381_v51 = vpop.permute.xlu0 %380  ;;  %v2542_v53 = vld [vmem:[#allocation2 + $0x20] sm:$0xff]  ;;  %409 = vst.msk [vmem:[#allocation2 + $0x38] sm:$0xff] %vm400_vm5, %v379_v50  ;;  %656 = vrot.lane.b32.xlu1 %v2540_v52, %s2215_s17  ;;  %v2709_v27 = vmul.f32 %v2540_v52, %v2540_v52 }
 0x1cb   : > { %410 = vst.msk [vmem:[#allocation2 + $0x40] sm:$0x3] %vm403_vm6, %v381_v51  ;;  %658 = vrot.lane.b32.xlu0 %v2542_v53, %s2215_s17  ;;  %v2713_v28 = vmul.f32 %v2542_v53, %v2542_v53 }
 0x1cc   : > { %3794 = vst [vmem:[#allocation13_spill] sm:$0xff] %v2709_v27 }
 0x1cd   : > { %v383_v54 = vpop.permute.xlu1 %382  ;;  %v2550_v56 = vld [vmem:[#allocation2 + $0x28] sm:$0x3]  ;;  %3795 = vst [vmem:[#allocation14_spill] sm:$0xff] %v2713_v28 }
 0x1ce   : > { %v385_v55 = vpop.permute.xlu0 %384  ;;  %v2552_v57 = vld [vmem:[#allocation2 + $0x30] sm:$0xff]  ;;  %411 = vst.msk [vmem:[#allocation2 + $0x48] sm:$0xff] %vm400_vm5, %v383_v54  ;;  %660 = vrot.lane.b32.xlu1 %v2550_v56, %s2215_s17  ;;  %v2721_v29 = vmul.f32 %v2550_v56, %v2550_v56 }
 0x1cf   : > { %412 = vst.msk [vmem:[#allocation2 + $0x50] sm:$0xff] %vm400_vm5, %v385_v55  ;;  %662 = vrot.lane.b32.xlu0 %v2552_v57, %s2215_s17  ;;  %v2725_v30 = vmul.f32 %v2552_v57, %v2552_v57 }
 0x1d0   : > { %3796 = vst [vmem:[#allocation15_spill] sm:$0xff] %v2721_v29 }
 0x1d1   : > { %v387_v58 = vpop.permute.xlu1 %386  ;;  %v2560_v60 = vld [vmem:[#allocation2 + $0x38] sm:$0xff]  ;;  %3797 = vst [vmem:[#allocation16_spill] sm:$0xff] %v2725_v30 }
 0x1d2   : > { %v567_v59 = vpop.permute.xlu0 %566  ;;  %v2562_v61 = vld [vmem:[#allocation2 + $0x40] sm:$0x3]  ;;  %413 = vst.msk [vmem:[#allocation2 + $0x58] sm:$0x3] %vm403_vm6, %v387_v58  ;;  %664 = vrot.lane.b32.xlu1 %v2560_v60, %s2215_s17  ;;  %v2733_v31 = vmul.f32 %v2560_v60, %v2560_v60 }
 0x1d3   : > { %602 = vst.msk [vmem:[#allocation3] sm:$0xff] %vm400_vm5, %v567_v59  ;;  %666 = vrot.lane.b32.xlu0 %v2562_v61, %s2215_s17  ;;  %v2737_v32 = vmul.f32 %v2562_v61, %v2562_v61 }
 0x1d4   : > { %3798 = vst [vmem:[#allocation17_spill] sm:$0xff] %v2733_v31 }
 0x1d5   : > { %v569_v62 = vpop.permute.xlu1 %568  ;;  %v2570_v0 = vld [vmem:[#allocation2 + $0x48] sm:$0xff]  ;;  %3799 = vst [vmem:[#allocation18_spill] sm:$0xff] %v2737_v32 }
 0x1d6   : > { %v571_v63 = vpop.permute.xlu0 %570  ;;  %v2572_v1 = vld [vmem:[#allocation2 + $0x50] sm:$0xff]  ;;  %603 = vst.msk [vmem:[#allocation3 + $0x8] sm:$0xff] %vm400_vm5, %v569_v62  ;;  %668 = vrot.lane.b32.xlu1 %v2570_v0, %s2215_s17  ;;  %v2747_v34 = vmul.f32 %v2570_v0, %v2570_v0 }
 0x1d7   : > { %604 = vst.msk [vmem:[#allocation3 + $0x10] sm:$0x3] %vm403_vm6, %v571_v63  ;;  %670 = vrot.lane.b32.xlu0 %v2572_v1, %s2215_s17  ;;  %v2751_v35 = vmul.f32 %v2572_v1, %v2572_v1 }
 0x1d8   : > { %3800 = vst [vmem:[#allocation19_spill] sm:$0xff] %v2747_v34 }
 0x1d9   : > { %v573_v2 = vpop.permute.xlu1 %572  ;;  %v2580_v4 = vld [vmem:[#allocation2 + $0x58] sm:$0x3]  ;;  %3801 = vst [vmem:[#allocation20_spill] sm:$0xff] %v2751_v35 }
 0x1da   : > { %v575_v3 = vpop.permute.xlu0 %574  ;;  %605 = vst.msk [vmem:[#allocation3 + $0x18] sm:$0xff] %vm400_vm5, %v573_v2  ;;  %672 = vrot.lane.b32.xlu1 %v2580_v4, %s2215_s17  ;;  %v2615_v12 = vld [vmem:[#allocation3] sm:$0xff]  ;;  %v2763_v38 = vmul.f32 %v2580_v4, %v2580_v4 }
 0x1db   : > { %606 = vst.msk [vmem:[#allocation3 + $0x20] sm:$0xff] %vm400_vm5, %v575_v3  ;;  %698 = vrot.lane.b32.xlu0 %v2524_v45, %s2213_s20  ;;  %v2797_v50 = vmul.f32 %v2615_v12, %v2615_v12 }
 0x1dc   : > { %3802 = vst [vmem:[#allocation21_spill] sm:$0xff] %v2763_v38 }
 0x1dd   : > { %v577_v5 = vpop.permute.xlu1 %576  ;;  %v2621_v13 = vld [vmem:[#allocation3 + $0x8] sm:$0xff]  ;;  %3808 = vst [vmem:[#allocation27_spill] sm:$0xff] %v2797_v50 }
 0x1de   : > { %v579_v6 = vpop.permute.xlu0 %578  ;;  %607 = vst.msk [vmem:[#allocation3 + $0x28] sm:$0x3] %vm403_vm6, %v577_v5  ;;  %700 = vrot.lane.b32.xlu1 %v2530_v48, %s2213_s20  ;;  %v2623_v14 = vld [vmem:[#allocation3 + $0x10] sm:$0x3]  ;;  %v2807_v55 = vmul.f32 %v2621_v13, %v2621_v13 }
 0x1df   : > { %608 = vst.msk [vmem:[#allocation3 + $0x30] sm:$0xff] %vm400_vm5, %v579_v6  ;;  %702 = vrot.lane.b32.xlu0 %v2532_v49, %s2213_s20  ;;  %v2811_v58 = vmul.f32 %v2623_v14, %v2623_v14 }
 0x1e0   : > { %3810 = vst [vmem:[#allocation29_spill] sm:$0xff] %v2807_v55 }
 0x1e1   : > { %v581_v7 = vpop.permute.xlu1 %580  ;;  %v2629_v15 = vld [vmem:[#allocation3 + $0x18] sm:$0xff]  ;;  %3811 = vst [vmem:[#allocation30_spill] sm:$0xff] %v2811_v58 }
 0x1e2   : > { %v583_v8 = vpop.permute.xlu0 %582  ;;  %609 = vst.msk [vmem:[#allocation3 + $0x38] sm:$0xff] %vm400_vm5, %v581_v7  ;;  %704 = vrot.lane.b32.xlu1 %v2540_v52, %s2213_s20  ;;  %v2631_v16 = vld [vmem:[#allocation3 + $0x20] sm:$0xff]  ;;  %v2823_v63 = vmul.f32 %v2629_v15, %v2629_v15 }
 0x1e3   : > { %610 = vst.msk [vmem:[#allocation3 + $0x40] sm:$0x3] %vm403_vm6, %v583_v8  ;;  %706 = vrot.lane.b32.xlu0 %v2542_v53, %s2213_s20  ;;  %v2827_v2 = vmul.f32 %v2631_v16, %v2631_v16 }
 0x1e4   : > { %3814 = vst [vmem:[#allocation33_spill] sm:$0xff] %v2823_v63 }
 0x1e5   : > { %v585_v9 = vpop.permute.xlu1 %584  ;;  %v2637_v17 = vld [vmem:[#allocation3 + $0x28] sm:$0x3]  ;;  %3815 = vst [vmem:[#allocation34_spill] sm:$0xff] %v2827_v2 }
 0x1e6   : > { %v587_v10 = vpop.permute.xlu0 %586  ;;  %611 = vst.msk [vmem:[#allocation3 + $0x48] sm:$0xff] %vm400_vm5, %v585_v9  ;;  %708 = vrot.lane.b32.xlu1 %v2550_v56, %s2213_s20  ;;  %v2639_v18 = vld [vmem:[#allocation3 + $0x30] sm:$0xff]  ;;  %v2839_v6 = vmul.f32 %v2637_v17, %v2637_v17 }
 0x1e7   : > { %612 = vst.msk [vmem:[#allocation3 + $0x50] sm:$0xff] %vm400_vm5, %v587_v10  ;;  %710 = vrot.lane.b32.xlu0 %v2552_v57, %s2213_s20  ;;  %v2843_v7 = vmul.f32 %v2639_v18, %v2639_v18 }
 0x1e8   : > { %3818 = vst [vmem:[#allocation37_spill] sm:$0xff] %v2839_v6 }
 0x1e9   : > { %v589_v11 = vpop.permute.xlu1 %588  ;;  %v2645_v19 = vld [vmem:[#allocation3 + $0x38] sm:$0xff]  ;;  %3819 = vst [vmem:[#allocation38_spill] sm:$0xff] %v2843_v7 }
 0x1ea   : > { %613 = vst.msk [vmem:[#allocation3 + $0x58] sm:$0x3] %vm403_vm6, %v589_v11  ;;  %712 = vrot.lane.b32.xlu1 %v2560_v60, %s2213_s20  ;;  %v2647_v20 = vld [vmem:[#allocation3 + $0x40] sm:$0x3]  ;;  %v2855_v10 = vmul.f32 %v2645_v19, %v2645_v19 }
 0x1eb   : > { %714 = vrot.lane.b32.xlu0 %v2562_v61, %s2213_s20  ;;  %v2859_v11 = vmul.f32 %v2647_v20, %v2647_v20 }
 0x1ec   : > { %3822 = vst [vmem:[#allocation41_spill] sm:$0xff] %v2855_v10 }
 0x1ed   : > { %v2653_v21 = vld [vmem:[#allocation3 + $0x48] sm:$0xff]  ;;  %3823 = vst [vmem:[#allocation42_spill] sm:$0xff] %v2859_v11 }
 0x1ee   : > { %716 = vrot.lane.b32.xlu1 %v2570_v0, %s2213_s20  ;;  %v2655_v22 = vld [vmem:[#allocation3 + $0x50] sm:$0xff] }
 0x1ef   : > { %718 = vrot.lane.b32.xlu0 %v2572_v1, %s2213_s20 }
 0x1f1   : > { %v2661_v23 = vld [vmem:[#allocation3 + $0x58] sm:$0x3] }
 0x1f2   : > { %720 = vrot.lane.b32.xlu1 %v2580_v4, %s2213_s20 }
 0x1f3   : > { %852 = vrot.lane.b32.xlu0 %v2615_v12, %s2215_s17 }
 0x1f6   : > { %854 = vrot.lane.b32.xlu1 %v2621_v13, %s2215_s17 }
 0x1f7   : > { %856 = vrot.lane.b32.xlu0 %v2623_v14, %s2215_s17 }
 0x1fa   : > { %858 = vrot.lane.b32.xlu1 %v2629_v15, %s2215_s17 }
 0x1fb   : > { %860 = vrot.lane.b32.xlu0 %v2631_v16, %s2215_s17 }
 0x1fe   : > { %862 = vrot.lane.b32.xlu1 %v2637_v17, %s2215_s17 }
 0x1ff   : > { %864 = vrot.lane.b32.xlu0 %v2639_v18, %s2215_s17 }
 0x202   : > { %866 = vrot.lane.b32.xlu1 %v2645_v19, %s2215_s17 }
 0x203   : > { %868 = vrot.lane.b32.xlu0 %v2647_v20, %s2215_s17 }
 0x206   : > { %870 = vrot.lane.b32.xlu1 %v2653_v21, %s2215_s17 }
 0x207   : > { %872 = vrot.lane.b32.xlu0 %v2655_v22, %s2215_s17 }
 0x20a   : > { %874 = vrot.lane.b32.xlu1 %v2661_v23, %s2215_s17 }
 0x20b   : > { %900 = vrot.lane.b32.xlu0 %v2615_v12, %s2213_s20 }
 0x20e   : > { %902 = vrot.lane.b32.xlu1 %v2621_v13, %s2213_s20 }
 0x20f   : > { %904 = vrot.lane.b32.xlu0 %v2623_v14, %s2213_s20 }
 0x212   : > { %906 = vrot.lane.b32.xlu1 %v2629_v15, %s2213_s20 }
 0x213   : > { %908 = vrot.lane.b32.xlu0 %v2631_v16, %s2213_s20 }
 0x216   : > { %910 = vrot.lane.b32.xlu1 %v2637_v17, %s2213_s20 }
 0x217   : > { %912 = vrot.lane.b32.xlu0 %v2639_v18, %s2213_s20 }
 0x21a   : > { %914 = vrot.lane.b32.xlu1 %v2645_v19, %s2213_s20 }
 0x21b   : > { %916 = vrot.lane.b32.xlu0 %v2647_v20, %s2213_s20 }
 0x21e   : > { %918 = vrot.lane.b32.xlu1 %v2653_v21, %s2213_s20 }
 0x21f   : > { %920 = vrot.lane.b32.xlu0 %v2655_v22, %s2213_s20 }
 0x222   : > { %922 = vrot.lane.b32.xlu1 %v2661_v23, %s2213_s20 }
 0x223   : > { %1064 = vrot.lane.b32.xlu0 %v2689_v24, %s2215_s17 }
 0x226   : > { %1066 = vrot.lane.b32.xlu1 %v2697_v25, %s2215_s17 }
 0x227   : > { %1068 = vrot.lane.b32.xlu0 %v2701_v26, %s2215_s17 }
 0x22a   : > { %1070 = vrot.lane.b32.xlu1 %v2709_v27, %s2215_s17 }
 0x22b   : > { %1072 = vrot.lane.b32.xlu0 %v2713_v28, %s2215_s17 }
 0x22e   : > { %1074 = vrot.lane.b32.xlu1 %v2721_v29, %s2215_s17 }
 0x22f   : > { %1076 = vrot.lane.b32.xlu0 %v2725_v30, %s2215_s17 }
 0x232   : > { %1078 = vrot.lane.b32.xlu1 %v2733_v31, %s2215_s17 }
 0x233   : > { %1080 = vrot.lane.b32.xlu0 %v2737_v32, %s2215_s17 }
 0x235   : > { %v2743_v33 = vpop.permute.xlu0 %650 }
 0x236   : > { %1082 = vrot.lane.b32.xlu1 %v2747_v34, %s2215_s17 }
 0x237   : > { %1084 = vrot.lane.b32.xlu0 %v2751_v35, %s2215_s17 }
 0x238   : > { %v2757_v36 = vpop.permute.xlu1 %652 }
 0x239   : > { %v2759_v37 = vpop.permute.xlu0 %654 }
 0x23a   : > { %1086 = vrot.lane.b32.xlu1 %v2763_v38, %s2215_s17 }
 0x23b   : > { %1112 = vrot.lane.b32.xlu0 %v2689_v24, %s2213_s20 }
 0x23c   : > { %v2769_v39 = vpop.permute.xlu1 %656 }
 0x23d   : > { %v2771_v40 = vpop.permute.xlu0 %658 }
 0x23e   : > { %3803 = vst [vmem:[#allocation22_spill] sm:$0xff] %v2771_v40  ;;  %1114 = vrot.lane.b32.xlu1 %v2697_v25, %s2213_s20 }
 0x23f   : > { %1116 = vrot.lane.b32.xlu0 %v2701_v26, %s2213_s20 }
 0x240   : > { %v2777_v41 = vpop.permute.xlu1 %660 }
 0x241   : > { %3804 = vst [vmem:[#allocation23_spill] sm:$0xff] %v2777_v41  ;;  %v2779_v42 = vpop.permute.xlu0 %662 }
 0x242   : > { %3805 = vst [vmem:[#allocation24_spill] sm:$0xff] %v2779_v42  ;;  %1118 = vrot.lane.b32.xlu1 %v2709_v27, %s2213_s20 }
 0x243   : > { %1120 = vrot.lane.b32.xlu0 %v2713_v28, %s2213_s20 }
 0x244   : > { %v2785_v43 = vpop.permute.xlu1 %664 }
 0x245   : > { %3806 = vst [vmem:[#allocation25_spill] sm:$0xff] %v2785_v43  ;;  %v2787_v44 = vpop.permute.xlu0 %666 }
 0x246   : > { %3807 = vst [vmem:[#allocation26_spill] sm:$0xff] %v2787_v44  ;;  %1122 = vrot.lane.b32.xlu1 %v2721_v29, %s2213_s20 }
 0x247   : > { %1124 = vrot.lane.b32.xlu0 %v2725_v30, %s2213_s20 }
 0x248   : > { %v2793_v46 = vpop.permute.xlu1 %668 }
 0x249   : > { %v671_v47 = vpop.permute.xlu0 %670 }
 0x24a   : > { %1126 = vrot.lane.b32.xlu1 %v2733_v31, %s2213_s20 }
 0x24b   : > { %1276 = vrot.lane.b32.xlu0 %v2797_v50, %s2215_s17 }
 0x24c   : > { %v673_v51 = vpop.permute.xlu1 %672 }
 0x24d   : > { %v2803_v54 = vpop.permute.xlu0 %698 }
 0x24e   : > { %3809 = vst [vmem:[#allocation28_spill] sm:$0xff] %v2803_v54  ;;  %1278 = vrot.lane.b32.xlu1 %v2807_v55, %s2215_s17 }
 0x24f   : > { %1280 = vrot.lane.b32.xlu0 %v2811_v58, %s2215_s17 }
 0x250   : > { %v2817_v59 = vpop.permute.xlu1 %700 }
 0x251   : > { %3812 = vst [vmem:[#allocation31_spill] sm:$0xff] %v2817_v59  ;;  %v2819_v62 = vpop.permute.xlu0 %702 }
 0x252   : > { %3813 = vst [vmem:[#allocation32_spill] sm:$0xff] %v2819_v62  ;;  %1282 = vrot.lane.b32.xlu1 %v2823_v63, %s2215_s17 }
 0x253   : > { %1284 = vrot.lane.b32.xlu0 %v2827_v2, %s2215_s17 }
 0x254   : > { %v2833_v3 = vpop.permute.xlu1 %704 }
 0x255   : > { %3816 = vst [vmem:[#allocation35_spill] sm:$0xff] %v2833_v3  ;;  %v2835_v5 = vpop.permute.xlu0 %706 }
 0x256   : > { %3817 = vst [vmem:[#allocation36_spill] sm:$0xff] %v2835_v5  ;;  %1286 = vrot.lane.b32.xlu1 %v2839_v6, %s2215_s17  ;;  %v697_v5 = vadd.f32 %v673_v51, %v2580_v4 }
 0x257   : > { %1288 = vrot.lane.b32.xlu0 %v2843_v7, %s2215_s17 }
 0x258   : > { %v2849_v8 = vpop.permute.xlu1 %708 }
 0x259   : > { %3820 = vst [vmem:[#allocation39_spill] sm:$0xff] %v2849_v8  ;;  %v2851_v9 = vpop.permute.xlu0 %710  ;;  %v2875_v8 = vmul.f32 %v2655_v22, %v2655_v22 }
 0x25a   : > { %3821 = vst [vmem:[#allocation40_spill] sm:$0xff] %v2851_v9  ;;  %1290 = vrot.lane.b32.xlu1 %v2855_v10, %s2215_s17  ;;  %v2871_v9 = vmul.f32 %v2653_v21, %v2653_v21 }
 0x25b   : > { %1292 = vrot.lane.b32.xlu0 %v2859_v11, %s2215_s17  ;;  %3827 = vst [vmem:[#allocation46_spill] sm:$0xff] %v2875_v8 }
 0x25c   : > { %v2865_v31 = vpop.permute.xlu1 %712  ;;  %3826 = vst [vmem:[#allocation45_spill] sm:$0xff] %v2871_v9 }
 0x25d   : > { %3824 = vst [vmem:[#allocation43_spill] sm:$0xff] %v2865_v31  ;;  %v2867_v44 = vpop.permute.xlu0 %714  ;;  %v2883_v31 = vmul.f32 %v2661_v23, %v2661_v23 }
 0x25e   : > { %3825 = vst [vmem:[#allocation44_spill] sm:$0xff] %v2867_v44  ;;  %1294 = vrot.lane.b32.xlu1 %v2871_v9, %s2215_s17  ;;  %v696_v44 = vadd.f32 %v671_v47, %v2572_v1 }
 0x25f   : > { %1296 = vrot.lane.b32.xlu0 %v2875_v8, %s2215_s17  ;;  %3828 = vst [vmem:[#allocation47_spill] sm:$0xff] %v2883_v31 }
 0x260   : > { %v717_v30 = vpop.permute.xlu1 %716 }
 0x261   : > { %v719_v29 = vpop.permute.xlu0 %718 }
 0x262   : > { %1298 = vrot.lane.b32.xlu1 %v2883_v31, %s2215_s17  ;;  %v2889_v3 = vadd.f32 %v719_v29, %v696_v44 }
 0x263   : > { %1128 = vrot.lane.b32.xlu0 %v2737_v32, %s2213_s20 }
 0x264   : > { %v721_v28 = vpop.permute.xlu1 %720  ;;  %v3734_v59 = vrot.slane %v2889_v3, 1  ;;  %v3733_v47 = vrot.slane %v2889_v3, 2 }
 0x265   : > { %v853_v27 = vpop.permute.xlu0 %852  ;;  %v745_v62 = vadd.f32 %v721_v28, %v697_v5 }
 0x266   : > { %1130 = vrot.lane.b32.xlu1 %v2747_v34, %s2213_s20 }
 0x267   : > { %v777_v54 = vrot.slane %v745_v62, 1  ;;  %v814_v43 = vrot.slane %v745_v62, 2  ;;  %1132 = vrot.lane.b32.xlu0 %v2751_v35, %s2213_s20 }
 0x268   : > { %v855_v29 = vpop.permute.xlu1 %854 }
 0x269   : > { %v857_v44 = vpop.permute.xlu0 %856  ;;  %v778_v28 = vsel %vm758_vm7, %v3734_v59, %v777_v54  ;;  %v815_v51 = vsel %vm795_vm8, %v3733_v47, %v814_v43  ;;  %v888_v59 = vadd.f32 %v853_v27, %v2615_v12  ;;  %v695_v27 = vadd.f32 %v2793_v46, %v2570_v0 }
 0x26a   : > { %v794_v5 = vadd.f32 %v778_v28, %v2889_v3  ;;  %1134 = vrot.lane.b32.xlu1 %v2763_v38, %s2213_s20 }
 0x26b   : > { %1324 = vrot.lane.b32.xlu0 %v2797_v50, %s2213_s20 }
 0x26c   : > { %v2910_v62 = vadd.f32 %v815_v51, %v794_v5  ;;  %v859_v35 = vpop.permute.xlu1 %858 }
 0x26d   : > { %v861_v34 = vpop.permute.xlu0 %860 }
 0x26e   : > { %1326 = vrot.lane.b32.xlu1 %v2807_v55, %s2213_s20 }
 0x26f   : > { %1328 = vrot.lane.b32.xlu0 %v2811_v58, %s2213_s20 }
 0x270   : > { %v863_v54 = vpop.permute.xlu1 %862 }
 0x271   : > { %v865_v43 = vpop.permute.xlu0 %864 }
 0x272   : > { %1330 = vrot.lane.b32.xlu1 %v2823_v63, %s2213_s20  ;;  %v894_v40 = vadd.f32 %v865_v43, %v2639_v18 }
 0x273   : > { %1332 = vrot.lane.b32.xlu0 %v2827_v2, %s2213_s20 }
 0x274   : > { %v867_v28 = vpop.permute.xlu1 %866 }
 0x275   : > { %v2920_v47 = vpop.permute.xlu0 %868  ;;  %v895_v43 = vadd.f32 %v867_v28, %v2645_v19 }
 0x276   : > { %1334 = vrot.lane.b32.xlu1 %v2839_v6, %s2213_s20  ;;  %v890_v6 = vadd.f32 %v857_v44, %v2623_v14  ;;  %v2955_v44 = vmul.f32 %v2621_v13, %v2530_v48 }
 0x277   : > { %1336 = vrot.lane.b32.xlu0 %v2843_v7, %s2213_s20  ;;  %v889_v7 = vadd.f32 %v855_v29, %v2621_v13  ;;  %v2967_v13 = vmul.f32 %v2629_v15, %v2540_v52 }
 0x278   : > { %v2926_v51 = vpop.permute.xlu1 %870  ;;  %3830 = vst [vmem:[#allocation49_spill] sm:$0xff] %v2955_v44 }
 0x279   : > { %v2928_v5 = vpop.permute.xlu0 %872  ;;  %3832 = vst [vmem:[#allocation51_spill] sm:$0xff] %v2967_v13 }
 0x27a   : > { %1338 = vrot.lane.b32.xlu1 %v2855_v10, %s2213_s20 }
 0x27b   : > { %1340 = vrot.lane.b32.xlu0 %v2859_v11, %s2213_s20 }
 0x27c   : > { %v2935_v2 = vpop.permute.xlu1 %874 }
 0x27d   : > { %v901_v63 = vpop.permute.xlu0 %900 }
 0x27e   : > { %v936_v58 = vadd.f32 %v901_v63, %v888_v59  ;;  %1342 = vrot.lane.b32.xlu1 %v2871_v9, %s2213_s20  ;;  %v2947_v59 = vmul.f32 %v2615_v12, %v2524_v45  ;;  %v2949_v63 = vadd.f32 %v717_v30, %v695_v27  ;;  %v891_v12 = vadd.f32 %v859_v35, %v2629_v15 }
 0x27f   : > { %1344 = vrot.lane.b32.xlu0 %v2875_v8, %s2213_s20  ;;  %v892_v30 = vadd.f32 %v861_v34, %v2631_v16  ;;  %v893_v15 = vadd.f32 %v863_v54, %v2637_v17 }
 0x280   : > { %v903_v10 = vpop.permute.xlu1 %902  ;;  %3829 = vst [vmem:[#allocation48_spill] sm:$0xff] %v2947_v59  ;;  %v960_v9 = vrot.slane %v936_v58, 1  ;;  %v996_v29 = vrot.slane %v936_v58, 2 }
 0x281   : > { %v905_v55 = vpop.permute.xlu0 %904  ;;  %v937_v11 = vadd.f32 %v903_v10, %v889_v7  ;;  %v2963_v10 = vmul.f32 %v2623_v14, %v2532_v49  ;;  %v774_v14 = vrot.slane %v2949_v63, 1 }
 0x282   : > { %v938_v50 = vadd.f32 %v905_v55, %v890_v6  ;;  %1346 = vrot.lane.b32.xlu1 %v2883_v31, %s2213_s20 }
 0x283   : > { %v961_v46 = vrot.slane %v937_v11, 1  ;;  %v997_v8 = vrot.slane %v937_v11, 2  ;;  %1488 = vrot.lane.b32.xlu0 %v2947_v59, %s2215_s17  ;;  %3831 = vst [vmem:[#allocation50_spill] sm:$0xff] %v2963_v10 }
 0x284   : > { %v963_v38 = vrot.slane %v938_v50, 1  ;;  %v999_v7 = vrot.slane %v938_v50, 2  ;;  %v907_v55 = vpop.permute.xlu1 %906 }
 0x285   : > { %v909_v6 = vpop.permute.xlu0 %908  ;;  %v962_v27 = vsel %vm758_vm7, %v960_v9, %v961_v46  ;;  %v998_v50 = vsel %vm795_vm8, %v996_v29, %v997_v8  ;;  %v939_v42 = vadd.f32 %v907_v55, %v891_v12 }
 0x286   : > { %v964_v31 = vsel %vm758_vm7, %v961_v46, %v963_v38  ;;  %v1000_v35 = vsel %vm795_vm8, %v997_v8, %v999_v7  ;;  %v988_v32 = vadd.f32 %v962_v27, %v936_v58  ;;  %v940_v41 = vadd.f32 %v909_v6, %v892_v30  ;;  %1490 = vrot.lane.b32.xlu1 %v2955_v44, %s2215_s17 }
 0x287   : > { %v989_v34 = vadd.f32 %v964_v31, %v937_v11  ;;  %1492 = vrot.lane.b32.xlu0 %v2963_v10, %s2215_s17  ;;  %v2982_v38 = vmul.f32 %v2631_v16, %v2542_v53  ;;  %v965_v8 = vrot.slane %v939_v42, 1  ;;  %v1001_v9 = vrot.slane %v939_v42, 2 }
 0x288   : > { %v2984_v58 = vadd.f32 %v998_v50, %v988_v32  ;;  %v911_v11 = vpop.permute.xlu1 %910  ;;  %v966_v46 = vrot.slane %v940_v41, 1  ;;  %v1002_v7 = vrot.slane %v940_v41, 2  ;;  %v2993_v16 = vmul.f32 %v2637_v17, %v2550_v56 }
 0x289   : > { %3833 = vst [vmem:[#allocation52_spill] sm:$0xff] %v2982_v38  ;;  %v2986_v31 = vadd.f32 %v1000_v35, %v989_v34  ;;  %v913_v29 = vpop.permute.xlu0 %912  ;;  %v941_v54 = vadd.f32 %v911_v11, %v893_v15  ;;  %v2997_v32 = vmul.f32 %v2639_v18, %v2552_v57  ;;  %v3008_v18 = vmul.f32 %v2645_v19, %v2560_v60 }
 0x28a   : > { %v942_v12 = vadd.f32 %v913_v29, %v894_v40  ;;  %1494 = vrot.lane.b32.xlu1 %v2967_v13, %s2215_s17  ;;  %3835 = vst [vmem:[#allocation54_spill] sm:$0xff] %v2993_v16  ;;  %v967_v30 = vsel %vm758_vm7, %v965_v8, %v966_v46  ;;  %v1003_v55 = vsel %vm795_vm8, %v1001_v9, %v1002_v7  ;;  %v3837_v40 = vrot.slane %v2889_v3, 1 }
 0x28b   : > { %3834 = vst [vmem:[#allocation53_spill] sm:$0xff] %v2986_v31  ;;  %3836 = vst [vmem:[#allocation55_spill] sm:$0xff] %v2997_v32  ;;  %v968_v6 = vrot.slane %v941_v54, 1  ;;  %v1004_v27 = vrot.slane %v941_v54, 2  ;;  %1496 = vrot.lane.b32.xlu0 %v2982_v38, %s2215_s17  ;;  %v990_v50 = vadd.f32 %v967_v30, %v939_v42  ;;  %v3012_v34 = vmul.f32 %v2647_v20, %v2562_v61 }
 0x28c   : > { %v776_v28 = vsel %vm758_vm7, %v774_v14, %v3837_v40  ;;  %v915_v17 = vpop.permute.xlu1 %914  ;;  %3838 = vst [vmem:[#allocation56_spill] sm:$0xff] %v3008_v18  ;;  %v896_v15 = vadd.f32 %v2920_v47, %v2647_v20  ;;  %v811_v42 = vrot.slane %v2949_v63, 2  ;;  %v970_v54 = vrot.slane %v942_v12, 1 }
 0x28d   : > { %v917_v35 = vpop.permute.xlu0 %916  ;;  %3839 = vst [vmem:[#allocation57_spill] sm:$0xff] %v3012_v34  ;;  %v969_v8 = vsel %vm758_vm7, %v966_v46, %v968_v6  ;;  %v1005_v9 = vsel %vm795_vm8, %v1002_v7, %v1004_v27  ;;  %v943_v11 = vadd.f32 %v915_v17, %v895_v43  ;;  %v3019_v14 = vadd.f32 %v1003_v55, %v990_v50 }
 0x28e   : > { %v991_v29 = vadd.f32 %v969_v8, %v940_v41  ;;  %1498 = vrot.lane.b32.xlu1 %v2993_v16, %s2215_s17  ;;  %v1006_v19 = vrot.slane %v942_v12, 2  ;;  %v944_v31 = vadd.f32 %v917_v35, %v896_v15  ;;  %v793_v20 = vadd.f32 %v776_v28, %v2949_v63 }
 0x28f   : > { %v971_v30 = vrot.slane %v943_v11, 1  ;;  %v1007_v40 = vrot.slane %v943_v11, 2  ;;  %1500 = vrot.lane.b32.xlu0 %v2997_v32, %s2215_s17  ;;  %v897_v47 = vadd.f32 %v2926_v51, %v2653_v21  ;;  %v898_v46 = vadd.f32 %v2928_v5, %v2655_v22 }
 0x290   : > { %v3030_v41 = vadd.f32 %v1005_v9, %v991_v29  ;;  %v919_v7 = vpop.permute.xlu1 %918  ;;  %v973_v27 = vrot.slane %v944_v31, 1  ;;  %v1009_v50 = vrot.slane %v944_v31, 2  ;;  %v3038_v51 = vmul.f32 %v2653_v21, %v2570_v0 }
 0x291   : > { %v921_v43 = vpop.permute.xlu0 %920  ;;  %v972_v55 = vsel %vm758_vm7, %v970_v54, %v971_v30  ;;  %v1008_v6 = vsel %vm795_vm8, %v1006_v19, %v1007_v40  ;;  %v945_v35 = vadd.f32 %v919_v7, %v897_v47  ;;  %v3042_v5 = vmul.f32 %v2655_v22, %v2572_v1 }
 0x292   : > { %v992_v17 = vadd.f32 %v972_v55, %v942_v12  ;;  %1502 = vrot.lane.b32.xlu1 %v3008_v18, %s2215_s17  ;;  %3840 = vst [vmem:[#allocation58_spill] sm:$0xff] %v3038_v51  ;;  %v3842_v63 = vrot.slane %v2889_v3, 2  ;;  %v974_v15 = vsel %vm758_vm7, %v971_v30, %v973_v27  ;;  %v1010_v31 = vsel %vm795_vm8, %v1007_v40, %v1009_v50 }
 0x293   : > { %3841 = vst [vmem:[#allocation59_spill] sm:$0xff] %v3042_v5  ;;  %v946_v12 = vadd.f32 %v921_v43, %v898_v46  ;;  %1504 = vrot.lane.b32.xlu0 %v3012_v34, %s2215_s17  ;;  %v899_v0 = vadd.f32 %v2935_v2, %v2661_v23  ;;  %v993_v1 = vadd.f32 %v974_v15, %v943_v11  ;;  %v975_v3 = vrot.slane %v945_v35, 1 }
 0x294   : > { %v813_v28 = vsel %vm795_vm8, %v811_v42, %v3842_v63  ;;  %v3053_v21 = vadd.f32 %v1008_v6, %v992_v17  ;;  %v923_v22 = vpop.permute.xlu1 %922  ;;  %v1011_v29 = vrot.slane %v945_v35, 2  ;;  %v3065_v43 = vmul.f32 %v2661_v23, %v2580_v4 }
 0x295   : > { %v830_v8 = vadd.f32 %v813_v28, %v793_v20  ;;  %v1065_v9 = vpop.permute.xlu0 %1064  ;;  %v976_v42 = vrot.slane %v946_v12, 1  ;;  %v1012_v54 = vrot.slane %v946_v12, 2  ;;  %v3055_v19 = vadd.f32 %v1010_v31, %v993_v1 }
 0x296   : > { %v947_v30 = vadd.f32 %v923_v22, %v899_v0  ;;  %1506 = vrot.lane.b32.xlu1 %v3038_v51, %s2215_s17  ;;  %3843 = vst [vmem:[#allocation60_spill] sm:$0xff] %v3065_v43  ;;  %v839_v50 = vmul.f32 0.11111111, %v2910_v62 }
 0x297   : > { %v977_v40 = vsel %vm758_vm7, %v975_v3, %v976_v42  ;;  %v1013_v20 = vsel %vm795_vm8, %v1011_v29, %v1012_v54  ;;  %1508 = vrot.lane.b32.xlu0 %v3042_v5, %s2215_s17  ;;  %v838_v2 = vmul.f32 0.11111111, %v830_v8 }
 0x298   : > { %v994_v11 = vadd.f32 %v977_v40, %v945_v35  ;;  %v978_v47 = vrot.slane %v947_v30, 1  ;;  %v1067_v46 = vpop.permute.xlu1 %1066  ;;  %v1014_v55 = vrot.slane %v947_v30, 2  ;;  %v1731_v8 = vmul.f32 2.0, %v839_v50 }
 0x299   : > { %v1069_v7 = vpop.permute.xlu0 %1068  ;;  %v1730_v35 = vmul.f32 2.0, %v838_v2  ;;  %v3080_v62 = vmul.f32 %v838_v2, %v838_v2 }
 0x29a   : > { %v1030_v6 = vadd.f32 %v1013_v20, %v994_v11  ;;  %v979_v27 = vsel %vm758_vm7, %v976_v42, %v978_v47  ;;  %1510 = vrot.lane.b32.xlu1 %v3065_v43, %s2215_s17  ;;  %v1015_v63 = vsel %vm795_vm8, %v1012_v54, %v1014_v55  ;;  %v3096_v42 = vmul.f32 %v839_v50, %v839_v50 }
 0x29b   : > { %v995_v17 = vadd.f32 %v979_v27, %v946_v12  ;;  %1536 = vrot.lane.b32.xlu0 %v2947_v59, %s2213_s20  ;;  %v1100_v27 = vadd.f32 %v1065_v9, %v2689_v24  ;;  %v687_v24 = vadd.f32 %v2757_v36, %v2530_v48  ;;  %v688_v9 = vadd.f32 %v2759_v37, %v2532_v49  ;;  %v3853_v36 = vld [vmem:[#allocation25_spill] sm:$0xff]  ;;  %v3854_v37 = vld [vmem:[#allocation28_spill] sm:$0xff] }
 0x29c   : > { %v1038_v28 = vmul.f32 0.11111111, %v1030_v6  ;;  %v1071_v15 = vpop.permute.xlu1 %1070  ;;  %v693_v49 = vadd.f32 %v3853_v36, %v2560_v60  ;;  %v3884_v59 = vld [vmem:[#allocation20_spill] sm:$0xff] }
 0x29d   : > { %v1073_v4 = vpop.permute.xlu0 %1072  ;;  %v1031_v23 = vadd.f32 %v1015_v63, %v995_v17  ;;  %v686_v63 = vadd.f32 %v2743_v33, %v2524_v45 }
 0x29e   : > { %v3074_v31 = vmul.f32 %v1730_v35, %v1038_v28  ;;  %1538 = vrot.lane.b32.xlu1 %v2955_v44, %s2213_s20  ;;  %v3082_v12 = vmul.f32 %v1038_v28, %v1038_v28  ;;  %v3110_v11 = vmul.f32 %v1038_v28, %v838_v2  ;;  %v1101_v35 = vadd.f32 %v1067_v46, %v2697_v25  ;;  %v3851_v25 = vld [vmem:[#allocation23_spill] sm:$0xff]  ;;  %v3852_v46 = vld [vmem:[#allocation24_spill] sm:$0xff] }
 0x29f   : > { %v1039_v0 = vmul.f32 0.11111111, %v1031_v23  ;;  %1540 = vrot.lane.b32.xlu0 %v2963_v10, %s2213_s20  ;;  %v1102_v28 = vadd.f32 %v1069_v7, %v2701_v26  ;;  %v689_v23 = vadd.f32 %v2769_v39, %v2540_v52  ;;  %v691_v26 = vadd.f32 %v3851_v25, %v2550_v56 }
 0x2a0   : > { %3844 = vst [vmem:[#allocation61_spill] sm:$0xff] %v3074_v31  ;;  %v3084_v1 = vpop.permute.xlu1 %1074  ;;  %v3092_v29 = vadd.f32 %v3082_v12, %v3080_v62  ;;  %3848 = vst [vmem:[#allocation65_spill] sm:$0xff] %v3110_v11  ;;  %v3149_v7 = vadd.f32 %v3852_v46, %v2552_v57 }
 0x2a1   : > { %v3086_v22 = vpop.permute.xlu0 %1076  ;;  %v3088_v3 = vmul.f32 %v1731_v8, %v1039_v0  ;;  %v3098_v54 = vmul.f32 %v1039_v0, %v1039_v0  ;;  %v3112_v47 = vmul.f32 %v1039_v0, %v839_v50  ;;  %v3850_v8 = vld [vmem:[#allocation22_spill] sm:$0xff] }
 0x2a2   : > { %3846 = vst [vmem:[#allocation63_spill] sm:$0xff] %v3092_v29  ;;  %1542 = vrot.lane.b32.xlu1 %v2967_v13, %s2213_s20  ;;  %v690_v0 = vadd.f32 %v3850_v8, %v2542_v53  ;;  %v3897_v29 = vld [vmem:[#allocation45_spill] sm:$0xff] }
 0x2a3   : > { %3845 = vst [vmem:[#allocation62_spill] sm:$0xff] %v3088_v3  ;;  %1544 = vrot.lane.b32.xlu0 %v2982_v38, %s2213_s20  ;;  %v3108_v20 = vadd.f32 %v3098_v54, %v3096_v42  ;;  %3849 = vst [vmem:[#allocation66_spill] sm:$0xff] %v3112_v47  ;;  %v3855_v3 = vld [vmem:[#allocation31_spill] sm:$0xff] }
 0x2a4   : > { %v3102_v30 = vpop.permute.xlu1 %1078  ;;  %v3159_v57 = vadd.f32 %v3855_v3, %v687_v24 }
 0x2a5   : > { %v3104_v40 = vpop.permute.xlu0 %1080  ;;  %3847 = vst [vmem:[#allocation64_spill] sm:$0xff] %v3108_v20 }
 0x2a6   : > { %1546 = vrot.lane.b32.xlu1 %v2993_v16, %s2213_s20  ;;  %v3883_v16 = vld [vmem:[#allocation19_spill] sm:$0xff] }
 0x2a7   : > { %1548 = vrot.lane.b32.xlu0 %v2997_v32, %s2213_s20 }
 0x2a8   : > { %v3118_v55 = vpop.permute.xlu1 %1082 }
 0x2a9   : > { %v3120_v6 = vpop.permute.xlu0 %1084  ;;  %v1109_v38 = vadd.f32 %v3118_v55, %v3883_v16 }
 0x2aa   : > { %1550 = vrot.lane.b32.xlu1 %v3008_v18, %s2213_s20 }
 0x2ab   : > { %1552 = vrot.lane.b32.xlu0 %v3012_v34, %s2213_s20 }
 0x2ac   : > { %v3127_v2 = vpop.permute.xlu1 %1086 }
 0x2ad   : > { %v1113_v50 = vpop.permute.xlu0 %1112 }
 0x2ae   : > { %v1148_v17 = vadd.f32 %v1113_v50, %v1100_v27  ;;  %1554 = vrot.lane.b32.xlu1 %v3038_v51, %s2213_s20  ;;  %v3154_v50 = vadd.f32 %v3854_v37, %v686_v63 }
 0x2af   : > { %1556 = vrot.lane.b32.xlu0 %v3042_v5, %s2213_s20 }
 0x2b0   : > { %v1115_v45 = vpop.permute.xlu1 %1114  ;;  %v1172_v52 = vrot.slane %v1148_v17, 1  ;;  %v1208_v39 = vrot.slane %v1148_v17, 2 }
 0x2b1   : > { %v1117_v33 = vpop.permute.xlu0 %1116  ;;  %v1149_v27 = vadd.f32 %v1115_v45, %v1101_v35  ;;  %v3856_v35 = vld [vmem:[#allocation32_spill] sm:$0xff]  ;;  %v3857_v45 = vld [vmem:[#allocation13_spill] sm:$0xff] }
 0x2b2   : > { %v1150_v48 = vadd.f32 %v1117_v33, %v1102_v28  ;;  %1558 = vrot.lane.b32.xlu1 %v3065_v43, %s2213_s20  ;;  %v3162_v28 = vadd.f32 %v3856_v35, %v688_v9  ;;  %v1103_v60 = vadd.f32 %v1071_v15, %v3857_v45  ;;  %v3858_v33 = vld [vmem:[#allocation14_spill] sm:$0xff]  ;;  %v3859_v9 = vld [vmem:[#allocation35_spill] sm:$0xff]  ;;  %v3860_v15 = vld [vmem:[#allocation36_spill] sm:$0xff] }
 0x2b3   : > { %v1173_v53 = vrot.slane %v1149_v27, 1  ;;  %v1209_v8 = vrot.slane %v1149_v27, 2  ;;  %v1104_v63 = vadd.f32 %v1073_v4, %v3858_v33  ;;  %v3171_v35 = vadd.f32 %v3859_v9, %v689_v23  ;;  %v3861_v4 = vld [vmem:[#allocation15_spill] sm:$0xff] }
 0x2b4   : > { %v1175_v56 = vrot.slane %v1150_v48, 1  ;;  %v1211_v25 = vrot.slane %v1150_v48, 2  ;;  %v1119_v46 = vpop.permute.xlu1 %1118  ;;  %v3174_v45 = vadd.f32 %v3860_v15, %v690_v0  ;;  %v1105_v33 = vadd.f32 %v3084_v1, %v3861_v4  ;;  %v3863_v0 = vld [vmem:[#allocation26_spill] sm:$0xff]  ;;  %v3865_v15 = vld [vmem:[#allocation39_spill] sm:$0xff] }
 0x2b5   : > { %v1121_v36 = vpop.permute.xlu0 %1120  ;;  %v1174_v37 = vsel %vm758_vm7, %v1172_v52, %v1173_v53  ;;  %v1210_v47 = vsel %vm795_vm8, %v1208_v39, %v1209_v8  ;;  %v1151_v24 = vadd.f32 %v1119_v46, %v1103_v60  ;;  %v3862_v52 = vld [vmem:[#allocation16_spill] sm:$0xff]  ;;  %v759_v1 = vrot.slane %v3154_v50, 1 }
 0x2b6   : > { %v1176_v31 = vsel %vm758_vm7, %v1173_v53, %v1175_v56  ;;  %v1212_v48 = vsel %vm795_vm8, %v1209_v8, %v1211_v25  ;;  %v1200_v11 = vadd.f32 %v1174_v37, %v1148_v17  ;;  %v1152_v43 = vadd.f32 %v1121_v36, %v1104_v63 }
 0x2b7   : > { %v1201_v3 = vadd.f32 %v1176_v31, %v1149_v27  ;;  %v1106_v39 = vadd.f32 %v3086_v22, %v3862_v52  ;;  %v1177_v17 = vrot.slane %v1151_v24, 1  ;;  %v1213_v31 = vrot.slane %v1151_v24, 2  ;;  %v3864_v22 = vld [vmem:[#allocation17_spill] sm:$0xff] }
 0x2b8   : > { %v3180_v5 = vadd.f32 %v1210_v47, %v1200_v11  ;;  %v1123_v27 = vpop.permute.xlu1 %1122  ;;  %v1178_v56 = vrot.slane %v1152_v43, 1  ;;  %v1214_v23 = vrot.slane %v1152_v43, 2  ;;  %v694_v63 = vadd.f32 %v3863_v0, %v2562_v61 }
 0x2b9   : > { %v3182_v53 = vadd.f32 %v1212_v48, %v1201_v3  ;;  %v1125_v8 = vpop.permute.xlu0 %1124  ;;  %v1153_v25 = vadd.f32 %v1123_v27, %v1105_v33  ;;  %v760_v46 = vrot.slane %v3159_v57, 1  ;;  %v1107_v11 = vadd.f32 %v3102_v30, %v3864_v22 }
 0x2ba   : > { %v1154_v60 = vadd.f32 %v1125_v8, %v1106_v39  ;;  %v1179_v47 = vsel %vm758_vm7, %v1177_v17, %v1178_v56  ;;  %v1215_v36 = vsel %vm795_vm8, %v1213_v31, %v1214_v23  ;;  %v762_v3 = vrot.slane %v3162_v28, 1  ;;  %v3866_v31 = vld [vmem:[#allocation43_spill] sm:$0xff] }
 0x2bb   : > { %v1180_v37 = vrot.slane %v1153_v25, 1  ;;  %v1216_v48 = vrot.slane %v1153_v25, 2  ;;  %v764_v9 = vrot.slane %v3171_v35, 1  ;;  %v739_v4 = vadd.f32 %v3865_v15, %v691_v26  ;;  %v3867_v25 = vld [vmem:[#allocation44_spill] sm:$0xff] }
 0x2bc   : > { %v1202_v61 = vadd.f32 %v1179_v47, %v1151_v24  ;;  %v1127_v33 = vpop.permute.xlu1 %1126  ;;  %v765_v39 = vrot.slane %v3174_v45, 1  ;;  %v3203_v8 = vadd.f32 %v3866_v31, %v693_v49  ;;  %v742_v0 = vadd.f32 %v3867_v25, %v694_v63 }
 0x2bd   : > { %v3195_v52 = vpop.permute.xlu0 %1276  ;;  %v1181_v30 = vsel %vm758_vm7, %v1178_v56, %v1180_v37  ;;  %v1217_v17 = vsel %vm795_vm8, %v1214_v23, %v1216_v48  ;;  %v3200_v27 = vadd.f32 %v1127_v33, %v1107_v11  ;;  %v1182_v24 = vrot.slane %v1154_v60, 1  ;;  %v3868_v56 = vld [vmem:[#allocation40_spill] sm:$0xff] }
 0x2be   : > { %v3206_v22 = vadd.f32 %v1215_v36, %v1202_v61  ;;  %v1203_v26 = vadd.f32 %v1181_v30, %v1152_v43  ;;  %v1218_v47 = vrot.slane %v1154_v60, 2  ;;  %v767_v34 = vrot.slane %v739_v4, 1 }
 0x2bf   : > { %v3754_v15 = vrot.slane %v3200_v27, 1  ;;  %v3753_v51 = vrot.slane %v3200_v27, 2  ;;  %v740_v23 = vadd.f32 %v3868_v56, %v3149_v7  ;;  %v761_v63 = vsel %vm758_vm7, %v759_v1, %v760_v46 }
 0x2c0   : > { %v3212_v11 = vadd.f32 %v1217_v17, %v1203_v26  ;;  %v3214_v37 = vpop.permute.xlu1 %1278  ;;  %v763_v48 = vsel %vm758_vm7, %v760_v46, %v762_v3  ;;  %v770_v7 = vrot.slane %v3203_v8, 1  ;;  %v797_v33 = vrot.slane %v3159_v57, 2 }
 0x2c1   : > { %v3216_v49 = vpop.permute.xlu0 %1280  ;;  %v1184_v43 = vsel %vm758_vm7, %v1182_v24, %v3754_v15  ;;  %v1220_v36 = vsel %vm795_vm8, %v1218_v47, %v3753_v51  ;;  %v799_v30 = vrot.slane %v3162_v28, 2  ;;  %v766_v17 = vsel %vm758_vm7, %v764_v9, %v765_v39 }
 0x2c2   : > { %v1204_v61 = vadd.f32 %v1184_v43, %v1154_v60  ;;  %v772_v1 = vrot.slane %v742_v0, 1  ;;  %v787_v31 = vadd.f32 %v761_v63, %v3154_v50  ;;  %v768_v25 = vsel %vm758_vm7, %v765_v39, %v767_v34 }
 0x2c3   : > { %v769_v26 = vrot.slane %v740_v23, 1  ;;  %v796_v60 = vrot.slane %v3154_v50, 2  ;;  %v788_v3 = vadd.f32 %v763_v48, %v3159_v57  ;;  %v801_v28 = vrot.slane %v3171_v35, 2 }
 0x2c4   : > { %v3232_v24 = vadd.f32 %v1220_v36, %v1204_v61  ;;  %v3234_v47 = vpop.permute.xlu1 %1282  ;;  %v802_v9 = vrot.slane %v3174_v45, 2  ;;  %v789_v56 = vadd.f32 %v766_v17, %v3171_v35  ;;  %v804_v63 = vrot.slane %v739_v4, 2 }
 0x2c5   : > { %v3236_v46 = vpop.permute.xlu0 %1284  ;;  %v771_v34 = vsel %vm758_vm7, %v769_v26, %v770_v7  ;;  %v798_v39 = vsel %vm795_vm8, %v796_v60, %v797_v33  ;;  %v790_v43 = vadd.f32 %v768_v25, %v3174_v45  ;;  %v773_v36 = vsel %vm758_vm7, %v770_v7, %v772_v1 }
 0x2c6   : > { %v824_v61 = vadd.f32 %v798_v39, %v787_v31  ;;  %v800_v50 = vsel %vm795_vm8, %v797_v33, %v799_v30  ;;  %v807_v57 = vrot.slane %v3203_v8, 2  ;;  %v803_v15 = vsel %vm795_vm8, %v801_v28, %v802_v9  ;;  %v3870_v30 = vld [vmem:[#allocation53_spill] sm:$0xff] }
 0x2c7   : > { %v825_v51 = vadd.f32 %v800_v50, %v788_v3  ;;  %v791_v35 = vadd.f32 %v771_v34, %v740_v23  ;;  %v809_v4 = vrot.slane %v742_v0, 2  ;;  %v826_v26 = vadd.f32 %v803_v15, %v789_v56 }
 0x2c8   : > { %v3249_v48 = vpop.permute.xlu1 %1286  ;;  %v805_v60 = vsel %vm795_vm8, %v802_v9, %v804_v63  ;;  %v806_v45 = vrot.slane %v740_v23, 2  ;;  %v792_v7 = vadd.f32 %v773_v36, %v3203_v8  ;;  %v3257_v33 = vmul.f32 0.11111111, %v2984_v58 }
 0x2c9   : > { %v3252_v17 = vpop.permute.xlu0 %1288  ;;  %v827_v1 = vadd.f32 %v805_v60, %v790_v43  ;;  %v3260_v31 = vmul.f32 0.11111111, %v3870_v30  ;;  %v3262_v25 = vmul.f32 0.11111111, %v824_v61  ;;  %v3266_v0 = vmul.f32 0.11111111, %v3019_v14 }
 0x2ca   : > { %3869 = vst [vmem:[#allocation22_spill] sm:$0xff] %v3257_v33  ;;  %v808_v3 = vsel %vm795_vm8, %v806_v45, %v807_v57  ;;  %v3270_v28 = vmul.f32 0.11111111, %v825_v51  ;;  %v810_v8 = vsel %vm795_vm8, %v807_v57, %v809_v4  ;;  %v3274_v58 = vmul.f32 0.11111111, %v3030_v41 }
 0x2cb   : > { %3871 = vst [vmem:[#allocation23_spill] sm:$0xff] %v3260_v31  ;;  %3872 = vst [vmem:[#allocation24_spill] sm:$0xff] %v3262_v25  ;;  %v828_v23 = vadd.f32 %v808_v3, %v791_v35  ;;  %v3278_v56 = vmul.f32 0.11111111, %v826_v26  ;;  %v829_v63 = vadd.f32 %v810_v8, %v792_v7  ;;  %v3280_v34 = vmul.f32 0.11111111, %v827_v1 }
 0x2cc   : > { %3873 = vst [vmem:[#allocation25_spill] sm:$0xff] %v3266_v0  ;;  %v3268_v15 = vpop.permute.xlu1 %1290  ;;  %3874 = vst [vmem:[#allocation28_spill] sm:$0xff] %v3270_v28  ;;  %v3283_v14 = vmul.f32 0.11111111, %v3053_v21  ;;  %v3287_v51 = vmul.f32 %v3257_v33, %v3257_v33  ;;  %v3291_v39 = vmul.f32 %v3260_v31, %v3260_v31  ;;  %v3295_v41 = vmul.f32 %v3262_v25, %v3262_v25  ;;  %v3882_v1 = vld [vmem:[#allocation18_spill] sm:$0xff] }
 0x2cd   : > { %3875 = vst [vmem:[#allocation31_spill] sm:$0xff] %v3274_v58  ;;  %v3276_v9 = vpop.permute.xlu0 %1292  ;;  %3876 = vst [vmem:[#allocation32_spill] sm:$0xff] %v3278_v56  ;;  %v3301_v36 = vmul.f32 %v3266_v0, %v3266_v0  ;;  %v3303_v21 = vmul.f32 0.11111111, %v828_v23  ;;  %v3306_v61 = vmul.f32 0.11111111, %v3055_v19  ;;  %v3310_v50 = vmul.f32 %v3270_v28, %v3270_v28 }
 0x2ce   : > { %3877 = vst [vmem:[#allocation13_spill] sm:$0xff] %v3280_v34  ;;  %3878 = vst [vmem:[#allocation14_spill] sm:$0xff] %v3283_v14  ;;  %v3316_v35 = vmul.f32 %v3274_v58, %v3274_v58  ;;  %v3318_v4 = vmul.f32 0.11111111, %v829_v63  ;;  %v3322_v26 = vmul.f32 %v3278_v56, %v3278_v56  ;;  %v3326_v19 = vmul.f32 %v3280_v34, %v3280_v34 }
 0x2cf   : > { %3879 = vst [vmem:[#allocation35_spill] sm:$0xff] %v3303_v21  ;;  %3880 = vst [vmem:[#allocation36_spill] sm:$0xff] %v3306_v61  ;;  %v1772_v60 = vadd.f32 %v3287_v51, %v3295_v41  ;;  %v1773_v45 = vadd.f32 %v3291_v39, %v3310_v50  ;;  %v3334_v7 = vmul.f32 %v3283_v14, %v3283_v14 }
 0x2d0   : > { %v3297_v43 = vpop.permute.xlu1 %1294  ;;  %3881 = vst [vmem:[#allocation15_spill] sm:$0xff] %v3318_v4  ;;  %v1108_v30 = vadd.f32 %v3104_v40, %v3882_v1  ;;  %v1774_v23 = vadd.f32 %v3301_v36, %v3322_v26  ;;  %v3344_v8 = vmul.f32 %v3303_v21, %v3303_v21  ;;  %v1775_v18 = vadd.f32 %v3316_v35, %v3326_v19 }
 0x2d1   : > { %v3312_v57 = vpop.permute.xlu0 %1296  ;;  %v3350_v32 = vmul.f32 %v3306_v61, %v3306_v61  ;;  %v3354_v40 = vmul.f32 %v3318_v4, %v3318_v4  ;;  %v3358_v13 = vadd.f32 0.0001, %v1772_v60  ;;  %v3360_v10 = vadd.f32 0.0001, %v1773_v45 }
 0x2d2   : > { %v3364_v44 = vadd.f32 %v3334_v7, %v3344_v8  ;;  %v1110_v61 = vadd.f32 %v3120_v6, %v3884_v59  ;;  %v3368_v31 = vadd.f32 0.0001, %v1774_v23  ;;  %v3373_v60 = vadd.f32 0.0001, %v1775_v18 }
 0x2d3   : > { %v3377_v45 = vadd.f32 %v3350_v32, %v3354_v40  ;;  %v3885_v59 = vrot.slane %v3200_v27, 1  ;;  %v3886_v23 = vrot.slane %v3200_v27, 2  ;;  %v3392_v21 = vmul.f32 0.11111111, %v3206_v22 }
 0x2d4   : > { %v3338_v3 = vpop.permute.xlu1 %1298 }
 0x2d5   : > { %v1129_v63 = vpop.permute.xlu0 %1128 }
 0x2d6   : > { %v1156_v1 = vadd.f32 %v1129_v63, %v1108_v30  ;;  %v3371_v30 = vmul.f32 0.11111111, %v3180_v5  ;;  %v3380_v63 = vmul.f32 0.11111111, %v3182_v53  ;;  %v3395_v53 = vmul.f32 0.11111111, %v3212_v11 }
 0x2d8   : > { %v1185_v14 = vrot.slane %v1156_v1, 1  ;;  %v1221_v58 = vrot.slane %v1156_v1, 2  ;;  %v1131_v0 = vpop.permute.xlu1 %1130 }
 0x2d9   : > { %v1157_v16 = vadd.f32 %v1131_v0, %v1109_v38  ;;  %v1133_v55 = vpop.permute.xlu0 %1132  ;;  %v3887_v38 = vld [vmem:[#allocation21_spill] sm:$0xff] }
 0x2da   : > { %v1186_v6 = vsel %vm758_vm7, %v3885_v59, %v1185_v14  ;;  %v1222_v5 = vsel %vm795_vm8, %v3886_v23, %v1221_v58  ;;  %v1158_v1 = vadd.f32 %v1133_v55, %v1110_v61  ;;  %v1111_v18 = vadd.f32 %v3127_v2, %v3887_v38  ;;  %v3888_v61 = vld [vmem:[#allocation27_spill] sm:$0xff]  ;;  %v3889_v23 = vld [vmem:[#allocation29_spill] sm:$0xff] }
 0x2db   : > { %v1205_v0 = vadd.f32 %v1186_v6, %v3200_v27  ;;  %v1187_v33 = vrot.slane %v1157_v16, 1  ;;  %v1223_v4 = vrot.slane %v1157_v16, 2  ;;  %v1312_v55 = vadd.f32 %v3195_v52, %v3888_v61 }
 0x2dc   : > { %v1188_v34 = vrot.slane %v1158_v1, 1  ;;  %v1224_v14 = vrot.slane %v1158_v1, 2  ;;  %v1135_v59 = vpop.permute.xlu1 %1134  ;;  %v1313_v11 = vadd.f32 %v3214_v37, %v3889_v23  ;;  %v3422_v23 = vmul.f32 0.11111111, %v3232_v24 }
 0x2dd   : > { %v3401_v2 = vadd.f32 %v1222_v5, %v1205_v0  ;;  %v1159_v27 = vadd.f32 %v1135_v59, %v1111_v18  ;;  %v1325_v6 = vpop.permute.xlu0 %1324  ;;  %v3890_v18 = vld [vmem:[#allocation30_spill] sm:$0xff]  ;;  %v3891_v59 = vld [vmem:[#allocation33_spill] sm:$0xff] }
 0x2de   : > { %v1189_v38 = vsel %vm758_vm7, %v1187_v33, %v1188_v34  ;;  %v1225_v20 = vsel %vm795_vm8, %v1223_v4, %v1224_v14  ;;  %v1360_v25 = vadd.f32 %v1325_v6, %v1312_v55  ;;  %v1314_v0 = vadd.f32 %v3216_v49, %v3890_v18  ;;  %v3892_v33 = vld [vmem:[#allocation34_spill] sm:$0xff]  ;;  %v3893_v49 = vld [vmem:[#allocation37_spill] sm:$0xff] }
 0x2df   : > { %v1206_v56 = vadd.f32 %v1189_v38, %v1157_v16  ;;  %v1190_v28 = vrot.slane %v1159_v27, 1  ;;  %v1226_v58 = vrot.slane %v1159_v27, 2  ;;  %v1315_v37 = vadd.f32 %v3234_v47, %v3891_v59 }
 0x2e0   : > { %v1327_v61 = vpop.permute.xlu1 %1326  ;;  %v1316_v4 = vadd.f32 %v3236_v46, %v3892_v33  ;;  %v1317_v18 = vadd.f32 %v3249_v48, %v3893_v49  ;;  %v1384_v59 = vrot.slane %v1360_v25, 1  ;;  %v1420_v22 = vrot.slane %v1360_v25, 2 }
 0x2e1   : > { %v1242_v16 = vadd.f32 %v1225_v20, %v1206_v56  ;;  %v1191_v27 = vsel %vm758_vm7, %v1188_v34, %v1190_v28  ;;  %v1227_v55 = vsel %vm795_vm8, %v1224_v14, %v1226_v58  ;;  %v1329_v6 = vpop.permute.xlu0 %1328  ;;  %v1361_v5 = vadd.f32 %v1327_v61, %v1313_v11  ;;  %v3894_v14 = vld [vmem:[#allocation38_spill] sm:$0xff] }
 0x2e2   : > { %v1207_v38 = vadd.f32 %v1191_v27, %v1158_v1  ;;  %v1362_v52 = vadd.f32 %v1329_v6, %v1314_v0  ;;  %v1318_v58 = vadd.f32 %v3252_v17, %v3894_v14  ;;  %v3895_v27 = vld [vmem:[#allocation41_spill] sm:$0xff]  ;;  %v3896_v14 = vld [vmem:[#allocation42_spill] sm:$0xff] }
 0x2e3   : > { %v3426_v47 = vmul.f32 0.11111111, %v1242_v16  ;;  %v1385_v20 = vrot.slane %v1361_v5, 1  ;;  %v1421_v56 = vrot.slane %v1361_v5, 2 }
 0x2e4   : > { %v1243_v46 = vadd.f32 %v1227_v55, %v1207_v38  ;;  %v1387_v28 = vrot.slane %v1362_v52, 1  ;;  %v1331_v34 = vpop.permute.xlu1 %1330  ;;  %v1423_v1 = vrot.slane %v1362_v52, 2  ;;  %v1319_v55 = vadd.f32 %v3268_v15, %v3895_v27  ;;  %v3898_v52 = vld [vmem:[#allocation46_spill] sm:$0xff] }
 0x2e5   : > { %v1363_v11 = vadd.f32 %v1331_v34, %v1315_v37  ;;  %v1333_v0 = vpop.permute.xlu0 %1332  ;;  %v1386_v48 = vsel %vm758_vm7, %v1384_v59, %v1385_v20  ;;  %v1422_v33 = vsel %vm795_vm8, %v1420_v22, %v1421_v56  ;;  %v1320_v59 = vadd.f32 %v3276_v9, %v3896_v14 }
 0x2e6   : > { %v3432_v61 = vmul.f32 0.11111111, %v1243_v46  ;;  %v1388_v16 = vsel %vm758_vm7, %v1385_v20, %v1387_v28  ;;  %v1412_v6 = vadd.f32 %v1386_v48, %v1360_v25  ;;  %v1424_v17 = vsel %vm795_vm8, %v1421_v56, %v1423_v1 }
 0x2e7   : > { %v1413_v38 = vadd.f32 %v1388_v16, %v1361_v5  ;;  %v1389_v37 = vrot.slane %v1363_v11, 1  ;;  %v1425_v49 = vrot.slane %v1363_v11, 2  ;;  %v1364_v46 = vadd.f32 %v1333_v0, %v1316_v4 }
 0x2e8   : > { %v1335_v34 = vpop.permute.xlu1 %1334  ;;  %v1448_v22 = vadd.f32 %v1422_v33, %v1412_v6  ;;  %v1321_v25 = vadd.f32 %v3297_v43, %v3897_v29  ;;  %v1322_v4 = vadd.f32 %v3312_v57, %v3898_v52  ;;  %v3899_v57 = vsub.f32 %v3371_v30, %v3295_v41 }
 0x2e9   : > { %v1449_v24 = vadd.f32 %v1424_v17, %v1413_v38  ;;  %v1365_v20 = vadd.f32 %v1335_v34, %v1317_v18  ;;  %v1337_v28 = vpop.permute.xlu0 %1336  ;;  %v1390_v15 = vrot.slane %v1364_v46, 1  ;;  %v1426_v5 = vrot.slane %v1364_v46, 2 }
 0x2ea   : > { %v1366_v56 = vadd.f32 %v1337_v28, %v1318_v58  ;;  %v1456_v1 = vmul.f32 0.11111111, %v1448_v22 }
 0x2eb   : > { %v1457_v48 = vmul.f32 0.11111111, %v1449_v24  ;;  %v1392_v16 = vrot.slane %v1365_v20, 1  ;;  %v1428_v27 = vrot.slane %v1365_v20, 2  ;;  %v1391_v0 = vsel %vm758_vm7, %v1389_v37, %v1390_v15 }
 0x2ec   : > { %v1427_v9 = vsel %vm795_vm8, %v1425_v49, %v1426_v5  ;;  %v1394_v33 = vrot.slane %v1366_v56, 1  ;;  %v1339_v18 = vpop.permute.xlu1 %1338  ;;  %v1700_v6 = vsub.f32 %v1456_v1, %v3287_v51  ;;  %v1414_v43 = vadd.f32 %v1391_v0, %v1363_v11 }
 0x2ed   : > { %v1701_v29 = vsub.f32 %v1457_v48, %v3291_v39  ;;  %v1393_v58 = vsel %vm758_vm7, %v1390_v15, %v1392_v16  ;;  %v1341_v38 = vpop.permute.xlu0 %1340  ;;  %v1429_v17 = vsel %vm795_vm8, %v1426_v5, %v1428_v27  ;;  %v1367_v34 = vadd.f32 %v1339_v18, %v1319_v55 }
 0x2ee   : > { %v1415_v24 = vadd.f32 %v1393_v58, %v1364_v46  ;;  %v1368_v14 = vadd.f32 %v1341_v38, %v1320_v59  ;;  %v1788_v52 = vadd.f32 %v1700_v6, %v3899_v57  ;;  %v3900_v37 = vsub.f32 %v3380_v63, %v3310_v50 }
 0x2ef   : > { %v1450_v51 = vadd.f32 %v1427_v9, %v1414_v43  ;;  %v1430_v22 = vrot.slane %v1366_v56, 2  ;;  %v1395_v11 = vrot.slane %v1367_v34, 1  ;;  %v1431_v20 = vrot.slane %v1367_v34, 2  ;;  %v3901_v9 = vld [vmem:[#allocation47_spill] sm:$0xff] }
 0x2f0   : > { %v1789_v49 = vadd.f32 %v1701_v29, %v3900_v37  ;;  %v1451_v39 = vadd.f32 %v1429_v17, %v1415_v24  ;;  %v1397_v28 = vrot.slane %v1368_v14, 1  ;;  %v1343_v15 = vpop.permute.xlu1 %1342  ;;  %v1796_v46 = vadd.f32 0.0009, %v1788_v52 }
 0x2f1   : > { %v1458_v5 = vmul.f32 0.11111111, %v1450_v51  ;;  %v1369_v55 = vadd.f32 %v1343_v15, %v1321_v25  ;;  %v1345_v59 = vpop.permute.xlu0 %1344  ;;  %v1396_v41 = vsel %vm758_vm7, %v1394_v33, %v1395_v11  ;;  %v1432_v30 = vsel %vm795_vm8, %v1430_v22, %v1431_v20 }
 0x2f2   : > { %v1797_v1 = vadd.f32 0.0009, %v1789_v49  ;;  %v1459_v48 = vmul.f32 0.11111111, %v1451_v39  ;;  %v1398_v50 = vsel %vm758_vm7, %v1395_v11, %v1397_v28  ;;  %v3464_v63 = vmul.f32 %v1796_v46, %v3358_v13 }
 0x2f3   : > { %v1702_v27 = vsub.f32 %v1458_v5, %v3301_v36  ;;  %v1416_v0 = vadd.f32 %v1396_v41, %v1366_v56  ;;  %v1323_v25 = vadd.f32 %v3338_v3, %v3901_v9  ;;  %v1417_v6 = vadd.f32 %v1398_v50, %v1367_v34 }
 0x2f4   : > { %v3467_v16 = vmul.f32 %v1797_v1, %v3360_v10  ;;  %v1703_v18 = vsub.f32 %v1459_v48, %v3316_v35  ;;  %v1433_v33 = vrot.slane %v1368_v14, 2  ;;  %v1347_v29 = vpop.permute.xlu1 %1346  ;;  %v1249_v43 = vmul.f32 0.11111111, %v3401_v2 }
 0x2f5   : > { %v3902_v13 = vsub.f32 %v3392_v21, %v3322_v26  ;;  %v1452_v38 = vadd.f32 %v1432_v30, %v1416_v0  ;;  %v1399_v10 = vrot.slane %v1369_v55, 1  ;;  %v3477_v24 = vpop.permute.xlu0 %1488  ;;  %v3903_v36 = vsub.f32 %v3395_v53, %v3326_v19 }
 0x2f6   : > { %v1434_v3 = vsel %vm795_vm8, %v1431_v20, %v1433_v33  ;;  %v1435_v35 = vrot.slane %v1369_v55, 2  ;;  %v1370_v17 = vadd.f32 %v1345_v59, %v1322_v4  ;;  %v1371_v2 = vadd.f32 %v1347_v29, %v1323_v25 }
 0x2f7   : > { %v1790_v58 = vadd.f32 %v1702_v27, %v3902_v13  ;;  %v1791_v56 = vadd.f32 %v1703_v18, %v3903_v36  ;;  %v1460_v14 = vmul.f32 0.11111111, %v1452_v38  ;;  %v1453_v57 = vadd.f32 %v1434_v3, %v1417_v6  ;;  %v3908_v3 = vld [vmem:[#allocation28_spill] sm:$0xff] }
 0x2f8   : > { %v1688_v21 = vsub.f32 %v3422_v23, %v3344_v8  ;;  %v1400_v52 = vrot.slane %v1370_v17, 1  ;;  %v1436_v37 = vrot.slane %v1370_v17, 2  ;;  %v3485_v49 = vpop.permute.xlu1 %1490  ;;  %v1402_v22 = vrot.slane %v1371_v2, 1 }
 0x2f9   : > { %v1798_v34 = vadd.f32 0.0009, %v1790_v58  ;;  %v1799_v26 = vadd.f32 0.0009, %v1791_v56  ;;  %v1704_v19 = vsub.f32 %v1460_v14, %v3334_v7  ;;  %v1461_v53 = vmul.f32 0.11111111, %v1453_v57  ;;  %v3491_v4 = vpop.permute.xlu0 %1492 }
 0x2fa   : > { %v1401_v11 = vsel %vm758_vm7, %v1399_v10, %v1400_v52  ;;  %v1437_v8 = vsel %vm795_vm8, %v1435_v35, %v1436_v37  ;;  %v1438_v23 = vrot.slane %v1371_v2, 2  ;;  %v1689_v20 = vsub.f32 %v1249_v43, %v3354_v40  ;;  %v3911_v57 = vld [vmem:[#allocation13_spill] sm:$0xff] }
 0x2fb   : > { %v3488_v51 = vmul.f32 %v1798_v34, %v3368_v31  ;;  %v3494_v39 = vmul.f32 %v1799_v26, %v3373_v60  ;;  %v1792_v28 = vadd.f32 %v1704_v19, %v1688_v21  ;;  %v1705_v31 = vsub.f32 %v1461_v53, %v3350_v32  ;;  %v3912_v21 = vld [vmem:[#allocation35_spill] sm:$0xff] }
 0x2fc   : > { %v1418_v15 = vadd.f32 %v1401_v11, %v1369_v55  ;;  %v1784_v7 = vadd.f32 0.0001, %v3364_v44  ;;  %v1403_v46 = vsel %vm758_vm7, %v1400_v52, %v1402_v22  ;;  %v1439_v1 = vsel %vm795_vm8, %v1436_v37, %v1438_v23  ;;  %v3503_v5 = vpop.permute.xlu1 %1494  ;;  %v3913_v52 = vld [vmem:[#allocation15_spill] sm:$0xff]  ;;  %v3914_v37 = vld [vmem:[#allocation22_spill] sm:$0xff]  ;;  %v3916_v11 = vld [vmem:[#allocation25_spill] sm:$0xff] }
 0x2fd   : > { %v1800_v60 = vadd.f32 0.0009, %v1792_v28  ;;  %v1793_v59 = vadd.f32 %v1705_v31, %v1689_v20  ;;  %v1419_v41 = vadd.f32 %v1403_v46, %v1370_v17  ;;  %v1497_v30 = vpop.permute.xlu0 %1496  ;;  %v1785_v50 = vadd.f32 0.0001, %v3377_v45  ;;  %v3905_v45 = vld [vmem:[#allocation63_spill] sm:$0xff]  ;;  %v3909_v17 = vld [vmem:[#allocation32_spill] sm:$0xff] }
 0x2fe   : > { %v1454_v48 = vadd.f32 %v1437_v8, %v1418_v15  ;;  %v3904_v6 = vsub.f32 %v3426_v47, %v3080_v62  ;;  %v1786_v13 = vadd.f32 0.0001, %v3905_v45  ;;  %v3906_v38 = vsub.f32 %v3432_v61, %v3096_v42  ;;  %v3915_v53 = vld [vmem:[#allocation23_spill] sm:$0xff]  ;;  %v3918_v15 = vld [vmem:[#allocation14_spill] sm:$0xff]  ;;  %v3919_v46 = vld [vmem:[#allocation36_spill] sm:$0xff] }
 0x2ff   : > { %v1808_v40 = vmul.f32 %v1800_v60, %v1784_v7  ;;  %v1801_v27 = vadd.f32 0.0009, %v1793_v59  ;;  %v1455_v32 = vadd.f32 %v1439_v1, %v1419_v41  ;;  %v1725_v35 = vmul.f32 2.0, %v3908_v3  ;;  %v3917_v28 = vld [vmem:[#allocation31_spill] sm:$0xff] }
 0x300   : > { %v1462_v0 = vmul.f32 0.11111111, %v1454_v48  ;;  %v1499_v55 = vpop.permute.xlu1 %1498  ;;  %v1726_v62 = vmul.f32 2.0, %v3909_v17  ;;  %v1727_v2 = vmul.f32 2.0, %v3911_v57  ;;  %v1728_v26 = vmul.f32 2.0, %v3912_v21 }
 0x301   : > { %v3506_v9 = vmul.f32 %v1801_v27, %v1785_v50  ;;  %v1463_v25 = vmul.f32 0.11111111, %v1455_v32  ;;  %v1501_v18 = vpop.permute.xlu0 %1500  ;;  %v1729_v42 = vmul.f32 2.0, %v3913_v52  ;;  %v1733_v22 = vmul.f32 %v1725_v35, %v3915_v53  ;;  %v3920_v50 = vld [vmem:[#allocation48_spill] sm:$0xff] }
 0x302   : > { %v1706_v44 = vsub.f32 %v1462_v0, %v3082_v12  ;;  %v3907_v12 = vld [vmem:[#allocation24_spill] sm:$0xff]  ;;  %v1734_v8 = vmul.f32 %v1726_v62, %v3916_v11  ;;  %v1735_v31 = vmul.f32 %v1727_v2, %v3917_v28  ;;  %v1736_v7 = vmul.f32 %v1728_v26, %v3918_v15  ;;  %v3926_v2 = vld [vmem:[#allocation55_spill] sm:$0xff] }
 0x303   : > { %v1707_v29 = vsub.f32 %v1463_v25, %v3098_v54  ;;  %v1724_v56 = vmul.f32 2.0, %v3907_v12  ;;  %v3910_v54 = vld [vmem:[#allocation64_spill] sm:$0xff]  ;;  %v1737_v1 = vmul.f32 %v1729_v42, %v3919_v46  ;;  %v3546_v48 = vadd.f32 0.0001, %v1733_v22 }
 0x304   : > { %v1794_v33 = vadd.f32 %v1706_v44, %v3904_v6  ;;  %v3513_v43 = vpop.permute.xlu1 %1502  ;;  %v1787_v34 = vadd.f32 0.0001, %v3910_v54  ;;  %v3548_v41 = vadd.f32 0.0001, %v1734_v8  ;;  %v1524_v27 = vadd.f32 %v3477_v24, %v3920_v50  ;;  %v3924_v35 = vld [vmem:[#allocation52_spill] sm:$0xff] }
 0x305   : > { %v1795_v10 = vadd.f32 %v1707_v29, %v3906_v38  ;;  %v3519_v36 = vpop.permute.xlu0 %1504  ;;  %v1732_v19 = vmul.f32 %v1724_v56, %v3914_v37  ;;  %v3552_v32 = vadd.f32 0.0001, %v1735_v31  ;;  %v3554_v44 = vadd.f32 0.0001, %v1736_v7 }
 0x306   : > { %v1802_v58 = vadd.f32 0.0009, %v1794_v33  ;;  %v3556_v25 = vadd.f32 0.0001, %v1737_v1  ;;  %v3560_v6 = vmul.f32 %v3914_v37, %v3907_v12  ;;  %2066 = vrcp.f32 %v3464_v63  ;;  %v3921_v33 = vld [vmem:[#allocation49_spill] sm:$0xff] }
 0x307   : > { %v1803_v14 = vadd.f32 0.0009, %v1795_v10  ;;  %v3544_v59 = vadd.f32 0.0001, %v1732_v19  ;;  %v1525_v29 = vadd.f32 %v3485_v49, %v3921_v33  ;;  %v3567_v24 = vmul.f32 %v3915_v53, %v3908_v3  ;;  %v3928_v1 = vld [vmem:[#allocation57_spill] sm:$0xff]  ;;  %v3929_v33 = vld [vmem:[#allocation58_spill] sm:$0xff] }
 0x308   : > { %v3524_v47 = vmul.f32 %v1802_v58, %v1786_v13  ;;  %v3530_v61 = vpop.permute.xlu1 %1506  ;;  %2068 = vrcp.f32 %v3467_v16  ;;  %v3922_v13 = vld [vmem:[#allocation50_spill] sm:$0xff]  ;;  %v3574_v10 = vmul.f32 %v3916_v11, %v3909_v17  ;;  %v3578_v63 = vmul.f32 %v3917_v28, %v3911_v57 }
 0x309   : > { %v3535_v23 = vmul.f32 %v1803_v14, %v1787_v34  ;;  %v3537_v20 = vpop.permute.xlu0 %1508  ;;  %v1526_v58 = vadd.f32 %v3491_v4, %v3922_v13  ;;  %2070 = vrcp.f32 %v3488_v51  ;;  %v3583_v56 = vmul.f32 %v3918_v15, %v3912_v21  ;;  %v3923_v4 = vld [vmem:[#allocation51_spill] sm:$0xff]  ;;  %v3925_v14 = vld [vmem:[#allocation54_spill] sm:$0xff] }
 0x30a   : > { %v3587_v16 = vmul.f32 %v3919_v46, %v3913_v52  ;;  %2072 = vrcp.f32 %v3494_v39  ;;  %v1527_v3 = vadd.f32 %v3503_v5, %v3923_v4  ;;  %v1528_v17 = vadd.f32 %v1497_v30, %v3924_v35  ;;  %v3927_v30 = vld [vmem:[#allocation56_spill] sm:$0xff]  ;;  %v3930_v35 = vld [vmem:[#allocation59_spill] sm:$0xff] }
 0x30b   : > { %2074 = vrcp.f32 %v1808_v40  ;;  %v1529_v57 = vadd.f32 %v1499_v55, %v3925_v14  ;;  %v1530_v21 = vadd.f32 %v1501_v18, %v3926_v2  ;;  %v1531_v40 = vadd.f32 %v3513_v43, %v3927_v30 }
 0x30c   : > { %v3542_v60 = vpop.permute.xlu1 %1510  ;;  %2076 = vrcp.f32 %v3506_v9  ;;  %v1532_v43 = vadd.f32 %v3519_v36, %v3928_v1 }
 0x30d   : > { %v1537_v0 = vpop.permute.xlu0 %1536  ;;  %2078 = vrcp.f32 %v3524_v47  ;;  %v1534_v47 = vadd.f32 %v3537_v20, %v3930_v35 }
 0x30e   : > { %v1572_v45 = vadd.f32 %v1537_v0, %v1524_v27  ;;  %2080 = vrcp.f32 %v3535_v23 }
 0x310   : > { %v1539_v38 = vpop.permute.xlu1 %1538  ;;  %v1596_v51 = vrot.slane %v1572_v45, 1  ;;  %v1632_v39 = vrot.slane %v1572_v45, 2 }
 0x311   : > { %v1573_v49 = vadd.f32 %v1539_v38, %v1525_v29  ;;  %v1541_v12 = vpop.permute.xlu0 %1540  ;;  %v1533_v29 = vadd.f32 %v3530_v61, %v3929_v33 }
 0x312   : > { %v1574_v62 = vadd.f32 %v1541_v12, %v1526_v58 }
 0x313   : > { %v1597_v54 = vrot.slane %v1573_v49, 1  ;;  %v1633_v34 = vrot.slane %v1573_v49, 2 }
 0x314   : > { %v1599_v26 = vrot.slane %v1574_v62, 1  ;;  %v1635_v42 = vrot.slane %v1574_v62, 2  ;;  %v1543_v52 = vpop.permute.xlu1 %1542 }
 0x315   : > { %v1598_v37 = vsel %vm758_vm7, %v1596_v51, %v1597_v54  ;;  %v1575_v5 = vadd.f32 %v1543_v52, %v1527_v3  ;;  %v1545_v19 = vpop.permute.xlu0 %1544  ;;  %v1634_v55 = vsel %vm795_vm8, %v1632_v39, %v1633_v34  ;;  %v2067_v3 = vpop.eup %2066 }
 0x316   : > { %v1624_v53 = vadd.f32 %v1598_v37, %v1572_v45  ;;  %v1600_v22 = vsel %vm758_vm7, %v1597_v54, %v1599_v26  ;;  %v1576_v11 = vadd.f32 %v1545_v19, %v1528_v17  ;;  %v1636_v8 = vsel %vm795_vm8, %v1633_v34, %v1635_v42  ;;  %v3931_v17 = vld [vmem:[#allocation60_spill] sm:$0xff]  ;;  %v2069_v54 = vpop.eup %2068 }
 0x317   : > { %v1625_v18 = vadd.f32 %v1600_v22, %v1573_v49  ;;  %v1601_v28 = vrot.slane %v1575_v5, 1  ;;  %v1637_v9 = vrot.slane %v1575_v5, 2  ;;  %v3612_v36 = vadd.f32 %v3542_v60, %v3931_v17  ;;  %v2071_v26 = vpop.eup %2070 }
 0x318   : > { %v1660_v31 = vadd.f32 %v1634_v55, %v1624_v53  ;;  %v1602_v15 = vrot.slane %v1576_v11, 1  ;;  %v1638_v7 = vrot.slane %v1576_v11, 2  ;;  %v1547_v46 = vpop.permute.xlu1 %1546  ;;  %v2073_v60 = vpop.eup %2072 }
 0x319   : > { %v1661_v50 = vadd.f32 %v1636_v8, %v1625_v18  ;;  %v1577_v27 = vadd.f32 %v1547_v46, %v1529_v57  ;;  %v1549_v0 = vpop.permute.xlu0 %1548  ;;  %v3619_v30 = vpop.eup %2074 }
 0x31a   : > { %v1668_v45 = vmul.f32 0.11111111, %v1660_v31  ;;  %v1603_v13 = vsel %vm758_vm7, %v1601_v28, %v1602_v15  ;;  %v1578_v58 = vadd.f32 %v1549_v0, %v1530_v21  ;;  %v1639_v61 = vsel %vm795_vm8, %v1637_v9, %v1638_v7 }
 0x31b   : > { %v1669_v38 = vmul.f32 0.11111111, %v1661_v50  ;;  %v1626_v49 = vadd.f32 %v1603_v13, %v1575_v5  ;;  %v1604_v12 = vrot.slane %v1577_v27, 1  ;;  %v1640_v4 = vrot.slane %v1577_v27, 2 }
 0x31c   : > { %v1716_v62 = vsub.f32 %v1668_v45, %v3560_v6  ;;  %v1551_v51 = vpop.permute.xlu1 %1550  ;;  %v1606_v2 = vrot.slane %v1578_v58, 1  ;;  %v1642_v19 = vrot.slane %v1578_v58, 2 }
 0x31d   : > { %v1717_v34 = vsub.f32 %v1669_v38, %v3567_v24  ;;  %v1662_v14 = vadd.f32 %v1639_v61, %v1626_v49  ;;  %v1605_v57 = vsel %vm758_vm7, %v1602_v15, %v1604_v12  ;;  %v1553_v21 = vpop.permute.xlu0 %1552  ;;  %v1579_v52 = vadd.f32 %v1551_v51, %v1531_v40 }
 0x31e   : > { %v1748_v42 = vmul.f32 2.0, %v1716_v62  ;;  %v1627_v20 = vadd.f32 %v1605_v57, %v1576_v11  ;;  %v1580_v39 = vadd.f32 %v1553_v21, %v1532_v43  ;;  %v1641_v6 = vsel %vm795_vm8, %v1638_v7, %v1640_v4  ;;  %v3622_v11 = vpop.eup %2076 }
 0x31f   : > { %v1749_v37 = vmul.f32 2.0, %v1717_v34  ;;  %v1670_v5 = vmul.f32 0.11111111, %v1662_v14  ;;  %v1607_v22 = vrot.slane %v1579_v52, 1  ;;  %v1643_v55 = vrot.slane %v1579_v52, 2  ;;  %v3631_v4 = vpop.eup %2078 }
 0x320   : > { %v1756_v53 = vadd.f32 0.0009, %v1748_v42  ;;  %v1663_v24 = vadd.f32 %v1641_v6, %v1627_v20  ;;  %v1609_v28 = vrot.slane %v1580_v39, 1  ;;  %v1645_v31 = vrot.slane %v1580_v39, 2  ;;  %v1555_v46 = vpop.permute.xlu1 %1554 }
 0x321   : > { %v1757_v18 = vadd.f32 0.0009, %v1749_v37  ;;  %v1718_v8 = vsub.f32 %v1670_v5, %v3574_v10  ;;  %v1608_v15 = vsel %vm758_vm7, %v1606_v2, %v1607_v22  ;;  %v1644_v7 = vsel %vm795_vm8, %v1642_v19, %v1643_v55  ;;  %v1557_v10 = vpop.permute.xlu0 %1556 }
 0x322   : > { %v1764_v40 = vmul.f32 %v1756_v53, %v3544_v59  ;;  %v1671_v9 = vmul.f32 0.11111111, %v1663_v24  ;;  %v1628_v50 = vadd.f32 %v1608_v15, %v1578_v58  ;;  %v1610_v27 = vsel %vm758_vm7, %v1607_v22, %v1609_v28 }
 0x323   : > { %v1765_v1 = vmul.f32 %v1757_v18, %v3546_v48  ;;  %v1750_v43 = vmul.f32 2.0, %v1718_v8  ;;  %v1629_v45 = vadd.f32 %v1610_v27, %v1579_v52  ;;  %v1646_v59 = vsel %vm795_vm8, %v1643_v55, %v1645_v31 }
 0x324   : > { %v1820_v0 = vmul.f32 %v2067_v3, %v1764_v40  ;;  %v1719_v33 = vsub.f32 %v1671_v9, %v3578_v63  ;;  %v1664_v49 = vadd.f32 %v1644_v7, %v1628_v50  ;;  %v1581_v12 = vadd.f32 %v1555_v46, %v1533_v29  ;;  %v1559_v6 = vpop.permute.xlu1 %1558 }
 0x325   : > { %v1821_v13 = vmul.f32 %v2069_v54, %v1765_v1  ;;  %v1758_v38 = vadd.f32 0.0009, %v1750_v43  ;;  %v1665_v48 = vadd.f32 %v1646_v59, %v1629_v45  ;;  %v1582_v62 = vadd.f32 %v1557_v10, %v1534_v47 }
 0x326   : > { %v1828_v35 = vsub.f32 1.0, %v1820_v0  ;;  %v1751_v17 = vmul.f32 2.0, %v1719_v33  ;;  %v1672_v51 = vmul.f32 0.11111111, %v1664_v49  ;;  %v1611_v3 = vrot.slane %v1581_v12, 1 }
 0x327   : > { %v1829_v58 = vsub.f32 1.0, %v1821_v13  ;;  %v1766_v61 = vmul.f32 %v1758_v38, %v3548_v41  ;;  %v1673_v14 = vmul.f32 0.11111111, %v1665_v48  ;;  %v1647_v57 = vrot.slane %v1581_v12, 2 }
 0x328   : > { %v1836_v34 = vmul.f32 0.5, %v1828_v35  ;;  %v1759_v63 = vadd.f32 0.0009, %v1751_v17  ;;  %v1720_v21 = vsub.f32 %v1672_v51, %v3583_v56  ;;  %v1612_v29 = vrot.slane %v1582_v62, 1 }
 0x329   : > { %v1837_v2 = vmul.f32 0.5, %v1829_v58  ;;  %v1822_v54 = vmul.f32 %v2071_v26, %v1766_v61  ;;  %v1721_v47 = vsub.f32 %v1673_v14, %v3587_v16  ;;  %v1648_v52 = vrot.slane %v1582_v62, 2  ;;  %v3934_v61 = vld [vmem:[#allocation66_spill] sm:$0xff] }
 0x32a   : > { %v1844_v42 = vmax.f32 %v1836_v34, 0.0  ;;  %v1767_v20 = vmul.f32 %v1759_v63, %v3552_v32  ;;  %v1752_v37 = vmul.f32 2.0, %v1720_v21  ;;  %v1613_v5 = vsel %vm758_vm7, %v1611_v3, %v1612_v29 }
 0x32b   : > { %v1845_v39 = vmax.f32 %v1837_v2, 0.0  ;;  %v1830_v41 = vsub.f32 1.0, %v1822_v54  ;;  %v1753_v24 = vmul.f32 2.0, %v1721_v47  ;;  %v1630_v26 = vadd.f32 %v1613_v5, %v1581_v12 }
 0x32c   : > { %v1852_v19 = vmin.f32 %v1844_v42, 1.0  ;;  %v1823_v53 = vmul.f32 %v2073_v60, %v1767_v20  ;;  %v1760_v55 = vadd.f32 0.0009, %v1752_v37  ;;  %v1649_v18 = vsel %vm795_vm8, %v1647_v57, %v1648_v52  ;;  %v3935_v57 = vld [vmem:[#allocation62_spill] sm:$0xff]  ;;  %v2081_v42 = vpop.eup %2080 }
 0x32d   : > { %v1853_v22 = vmin.f32 %v1845_v39, 1.0  ;;  %v1838_v56 = vmul.f32 0.5, %v1830_v41  ;;  %v1761_v16 = vadd.f32 0.0009, %v1753_v24  ;;  %v1666_v8 = vadd.f32 %v1649_v18, %v1630_v26 }
 0x32e   : > { %1861 = vst.msk [vmem:[%s3640_s28] sm:$0xff] %vm1860_vm9, %v1852_v19  ;;  %v1831_v32 = vsub.f32 1.0, %v1823_v53  ;;  %v1583_v28 = vadd.f32 %v1559_v6, %v3612_v36  ;;  %v1768_v31 = vmul.f32 %v1760_v55, %v3554_v44  ;;  %v3932_v36 = vld [vmem:[#allocation65_spill] sm:$0xff]  ;;  %v1747_v2 = vadd.f32 0.0001, %v3935_v57 }
 0x32f   : > { %1862 = vst.msk [vmem:[%s3640_s28 + $0x8] sm:$0xff] %vm1860_vm9, %v1853_v22  ;;  %v1846_v60 = vmax.f32 %v1838_v56, 0.0  ;;  %v1769_v9 = vmul.f32 %v1761_v16, %v3556_v25  ;;  %v1674_v15 = vmul.f32 0.11111111, %v1666_v8 }
 0x330   : > { %v1839_v40 = vmul.f32 0.5, %v1831_v32  ;;  %v1614_v7 = vrot.slane %v1583_v28, 1  ;;  %v1824_v1 = vmul.f32 %v3619_v30, %v1768_v31  ;;  %v1650_v43 = vrot.slane %v1583_v28, 2 }
 0x331   : > { %v1854_v46 = vmin.f32 %v1846_v60, 1.0  ;;  %v1825_v27 = vmul.f32 %v3622_v11, %v1769_v9  ;;  %v1722_v10 = vsub.f32 %v1674_v15, %v3932_v36  ;;  %v3933_v11 = vld [vmem:[#allocation61_spill] sm:$0xff] }
 0x332   : > { %v1847_v50 = vmax.f32 %v1839_v40, 0.0  ;;  %v1615_v0 = vsel %vm758_vm7, %v1612_v29, %v1614_v7  ;;  %v1832_v44 = vsub.f32 1.0, %v1824_v1  ;;  %v1651_v30 = vsel %vm795_vm8, %v1648_v52, %v1650_v43 }
 0x333   : > { %1863 = vst.msk [vmem:[%s3640_s28 + $0x10] sm:$0xff] %vm1860_vm9, %v1854_v46  ;;  %v1631_v25 = vadd.f32 %v1615_v0, %v1582_v62  ;;  %v1833_v45 = vsub.f32 1.0, %v1825_v27  ;;  %v1754_v59 = vmul.f32 2.0, %v1722_v10  ;;  %v1746_v49 = vadd.f32 0.0001, %v3933_v11 }
 0x334   : > { %v1855_v33 = vmin.f32 %v1847_v50, 1.0  ;;  %v1840_v13 = vmul.f32 0.5, %v1832_v44 }
 0x335   : > { %v1667_v38 = vadd.f32 %v1651_v30, %v1631_v25  ;;  %v1841_v12 = vmul.f32 0.5, %v1833_v45  ;;  %v1762_v35 = vadd.f32 0.0009, %v1754_v59 }
 0x336   : > { %1864 = vst.msk [vmem:[%s3640_s28 + $0x18] sm:$0xff] %vm1860_vm9, %v1855_v33  ;;  %v1848_v23 = vmax.f32 %v1840_v13, 0.0 }
 0x337   : > { %v1675_v17 = vmul.f32 0.11111111, %v1667_v38  ;;  %v1849_v48 = vmax.f32 %v1841_v12, 0.0  ;;  %v1770_v58 = vmul.f32 %v1762_v35, %v1746_v49 }
 0x338   : > { %v1856_v62 = vmin.f32 %v1848_v23, 1.0 }
 0x339   : > { %v1723_v51 = vsub.f32 %v1675_v17, %v3934_v61  ;;  %v1857_v3 = vmin.f32 %v1849_v48, 1.0  ;;  %v1826_v34 = vmul.f32 %v3631_v4, %v1770_v58 }
 0x33a   : > { %1865 = vst.msk [vmem:[%s3640_s28 + $0x20] sm:$0xff] %vm1860_vm9, %v1856_v62 }
 0x33b   : > { %v1755_v63 = vmul.f32 2.0, %v1723_v51  ;;  %1866 = vst.msk [vmem:[%s3640_s28 + $0x28] sm:$0xff] %vm1860_vm9, %v1857_v3  ;;  %v1834_v14 = vsub.f32 1.0, %v1826_v34 }
 0x33d   : > { %v1763_v54 = vadd.f32 0.0009, %v1755_v63  ;;  %v1842_v21 = vmul.f32 0.5, %v1834_v14 }
 0x33f   : > { %v1771_v29 = vmul.f32 %v1763_v54, %v1747_v2  ;;  %v1850_v20 = vmax.f32 %v1842_v21, 0.0 }
 0x341   : > { %v1827_v47 = vmul.f32 %v2081_v42, %v1771_v29  ;;  %v1858_v4 = vmin.f32 %v1850_v20, 1.0 }
 0x343   : > { %v1835_v52 = vsub.f32 1.0, %v1827_v47  ;;  %1867 = vst.msk [vmem:[%s3640_s28 + $0x30] sm:$0xff] %vm1860_vm9, %v1858_v4 }
 0x345   : > { %v1843_v39 = vmul.f32 0.5, %v1835_v52 }
 0x347   : > { %v1851_v41 = vmax.f32 %v1843_v39, 0.0 }
 0x349   : > { %v1859_v37 = vmin.f32 %v1851_v41, 1.0 }
 0x34b   : > { %1868 = vst.msk [vmem:[%s3640_s28 + $0x38] sm:$0xff] %vm1860_vm9, %v1859_v37 }
 0x34c   : > { %2151 = shalt.err (!%p2148_p4)
}
 0x34d   : > { %s2152_s4 = scalar_lea.hbm %s3674_s23, 1024  ;;  %s2156_s5 = scalar_lea.hbm %s3723_s2, 2048 }
 0x34e   : > { %p2153_p9 = scmp.ne.s32.totalorder %s3674_s23, %s2152_s4  ;;  %p2157_p5 = scmp.lt.s32.totalorder %s3674_s23, %s3723_s2 }
 0x34f   : > { %p2158_p8 = scmp.lt.s32.totalorder %s2156_s5, %s2152_s4 }
 0x350   : > { %p2154_p11 = pnand %p2153_p9, %p3936_p1 }
 0x351   : > { %p2159_p6 = por %p2158_p8, %p2157_p5 }
 0x352   : > { %p2155_p3 = pneg %p2154_p11 }
 0x354   : > { %p2160_p13 = pnand %p2159_p6, %p2155_p3 }
 0x356   : > { %2163 = shalt.err (!%p2160_p13)
}
 0x357   : > { %s2217_s14 = smov 128   ;;  %s2218_s17 = smov 8  }
 0x358   : > { %2011 = dma.vmem_to_hbm [thread:$0]  (%p3936_p1), %s3676_s24, 1024, %s3674_s23, %s1870_s25, %s2217_s14, %s2217_s14, %s2218_s17  }
 0x359 PF: > { %s1899_s28 = sand.u32 1, %s2194_s9   ;;  %p3937_p12 = scmp.ne.s32.totalorder %s3790_s22, 0 }
 0x35a   : > { %p3938_p7 = scmp.ge.s32.totalorder %s2206_s12, 2  ;;  %s1900_s19 = scalar_lea.sflag [#allocation6], %s1899_s28 }
 0x35c   : > { %p2021_p10 = pnand %p3938_p7, %p3937_p12 }
 0x35e   : > { %p2022_p0 = pneg %p2021_p10 }
 0x360   : > { %2189 = dma.done.wait (%p2022_p0), %s1900_s19, 1024  }
 0x361   : > { %2191 = vsyncadd (%p2022_p0), %s1900_s19, 4294966272  ;;  %p18_p2 = scmp.ge.s32.totalorder %s2259_s15, 4   ;;  %s3939_s9 = smov %s2198_s10 }
 0x362   : > { %s3940_s10 = smov %s2202_s11  ;;  %s3941_s11 = smov %s2271_s18 }
 0x363   : > { %s3942_s12 = smov %s2259_s15  ;;  %20 = sbr.rel (!%p18_p2) target bundleno = 7 (0x7), region = 86 }
 0x368   :  { %1905 = vsyncpa [#allocation5], 1 }
 0x369   :  { %1907 = vsyncpa [#allocation5 + $0x1], 1 }
 0x36a   :  { %1908 = vsyncpa [#allocation8], 1 }
 0x36b   :  { %1910 = vsyncpa [#allocation8 + $0x1], 1 }
 0x36c   :  { %1911 = vsyncpa [#allocation6], 1 }
 0x36d   :  { %1913 = vsyncpa [#allocation6 + $0x1], 1 }

</bundles_post_ra>
